<compile_context>
chip_gen: v7x
topology: tpu7x:2x2x1
jax: 0.10.0
libtpu: 0.0.40
codegen_flags: <defaults>
</compile_context>

<pallas_src>
import functools

import jax
import jax.numpy as jnp
from jax import lax
from jax.experimental import pallas as pl
from jax.experimental.pallas import tpu as pltpu


def _mha_flash_kernel(xq_ref, xkv_ref, wqkv_ref, wo_ref, bqkv_ref, bo_ref,
                      o_ref, q_sc, m_sc, l_sc, acc_sc, *, num_heads, scale):
    """One grid step: (batch b, q-tile qi, kv-tile ki).

    xq_ref:  (1, tq, E) bf16   x rows for the current q tile
    xkv_ref: (1, tk, E) bf16   x rows for the current kv tile
    wqkv_ref:(E, 3E)    bf16   fused [Wq^T | Wk^T | Wv^T]
    wo_ref:  (E, E)     bf16   Wo^T
    bqkv_ref:(1, 3E)    f32    fused [bq | bk | bv]
    bo_ref:  (1, E)     f32
    o_ref:   (1, tq, E)        output tile (written at last kv step)
    scratch: q_sc (tq,E) bf16, m_sc/l_sc (H,tq,1) f32, acc_sc (H,tq,Dh) f32
    """
    ki = pl.program_id(2)
    nk = pl.num_programs(2)

    H = num_heads
    tq, E = q_sc.shape
    Dh = E // H

    # ---- init per (b, q-tile): Q projection (scaled) + online-softmax state ----
    @pl.when(ki == 0)
    def _init():
        xq = xq_ref[0]                                               # (tq, E) bf16
        q = jnp.dot(xq, wqkv_ref[:, 0:E],
                    preferred_element_type=jnp.float32)              # (tq, E) f32
        q = (q + bqkv_ref[:, 0:E]) * scale
        q_sc[...] = q.astype(jnp.bfloat16)
        m_sc[...] = jnp.full(m_sc.shape, -jnp.inf, m_sc.dtype)
        l_sc[...] = jnp.zeros(l_sc.shape, l_sc.dtype)
        acc_sc[...] = jnp.zeros(acc_sc.shape, acc_sc.dtype)

    # ---- fused K/V projection for this kv tile (one MXU pass, bf16 in / f32 acc) ----
    xkv = xkv_ref[0]                                                 # (tk, E) bf16
    kv = jnp.dot(xkv, wqkv_ref[:, E:3 * E],
                 preferred_element_type=jnp.float32)                 # (tk, 2E) f32
    kv = kv + bqkv_ref[:, E:3 * E]
    k = kv[:, 0:E].astype(jnp.bfloat16)                              # (tk, E)
    v = kv[:, E:2 * E].astype(jnp.bfloat16)                          # (tk, E)

    q = q_sc[...]                                                    # (tq, E) bf16 (pre-scaled)

    # ---- per-head online softmax (static unrolled loop; no (S,H,Dh) reshape) ----
    for h in range(H):
        lo, hi = h * Dh, (h + 1) * Dh
        qh = q[:, lo:hi]                                             # (tq, Dh)
        kh = k[:, lo:hi]                                             # (tk, Dh)
        vh = v[:, lo:hi]                                             # (tk, Dh)

        s = lax.dot_general(qh, kh, (((1,), (1,)), ((), ())),
                            preferred_element_type=jnp.float32)      # (tq, tk) f32

        m_prev = m_sc[h]                                             # (tq, 1)
        m_new = jnp.maximum(m_prev, jnp.max(s, axis=-1, keepdims=True))
        alpha = jnp.exp(m_prev - m_new)
        p = jnp.exp(s - m_new)                                       # (tq, tk) f32 (unnormalized)

        l_sc[h] = alpha * l_sc[h] + jnp.sum(p, axis=-1, keepdims=True)
        acc_sc[h] = alpha * acc_sc[h] + jnp.dot(
            p.astype(jnp.bfloat16), vh, preferred_element_type=jnp.float32)
        m_sc[h] = m_new

    # ---- finalize: deferred normalization + output projection ----
    @pl.when(ki == nk - 1)
    def _finalize():
        parts = [acc_sc[h] * pl.reciprocal(l_sc[h], approx=True) for h in range(H)]
        ctx = jnp.concatenate(parts, axis=-1)                        # (tq, E) f32
        out = jnp.dot(ctx.astype(jnp.bfloat16), wo_ref[...],
                      preferred_element_type=jnp.float32) + bo_ref[:, :]
        o_ref[0] = out.astype(o_ref.dtype)


def multi_head_self_attention(x, params, num_heads, tq=None, tk=None):
    """x: (B, S, E) float32. params: dict of PyTorch-convention weights."""
    B, S, E = x.shape
    H = num_heads
    assert E % H == 0
    Dh = E // H
    scale = 1.0 / (Dh ** 0.5)

    # --- wrapper-side glue: fused, pre-transposed bf16 weights / f32 biases ---
    w_qkv = jnp.concatenate(
        [params['wq'].T, params['wk'].T, params['wv'].T], axis=1).astype(jnp.bfloat16)  # (E, 3E)
    b_qkv = jnp.concatenate(
        [params['bq'], params['bk'], params['bv']]).reshape(1, 3 * E).astype(jnp.float32)
    w_o = params['wo'].T.astype(jnp.bfloat16)                        # (E, E)
    b_o = params['bo'].reshape(1, E).astype(jnp.float32)

    x_bf16 = x.astype(jnp.bfloat16)

    # sequence tiling (multiple of 8, or the full sequence if it is small)
    if tq is None:
        tq = S if S <= 128 else 128
    if tk is None:
        tk = S if S <= 128 else 128
    # TODO(synk): support ragged S (pad + mask) instead of requiring divisibility.
    assert S % tq == 0 and S % tk == 0
    n_q, n_k = S // tq, S // tk

    kernel = functools.partial(_mha_flash_kernel, num_heads=H, scale=scale)

    grid_spec = pltpu.PrefetchScalarGridSpec(
        num_scalar_prefetch=0,
        grid=(B, n_q, n_k),
        in_specs=[
            pl.BlockSpec((1, tq, E), lambda b, qi, ki: (b, qi, 0)),   # x rows for Q
            pl.BlockSpec((1, tk, E), lambda b, qi, ki: (b, ki, 0)),   # x rows for K/V
            pl.BlockSpec((E, 3 * E), lambda b, qi, ki: (0, 0)),       # fused QKV weight (resident)
            pl.BlockSpec((E, E), lambda b, qi, ki: (0, 0)),           # output weight (resident)
            pl.BlockSpec((1, 3 * E), lambda b, qi, ki: (0, 0)),       # fused QKV bias
            pl.BlockSpec((1, E), lambda b, qi, ki: (0, 0)),           # output bias
        ],
        out_specs=pl.BlockSpec((1, tq, E), lambda b, qi, ki: (b, qi, 0)),
        scratch_shapes=[
            pltpu.VMEM((tq, E), jnp.bfloat16),      # pre-scaled Q tile
            pltpu.VMEM((H, tq, 1), jnp.float32),    # running max m
            pltpu.VMEM((H, tq, 1), jnp.float32),    # running denom l
            pltpu.VMEM((H, tq, Dh), jnp.float32),   # running (unnormalized) context
        ],
    )

    return pl.pallas_call(
        kernel,
        out_shape=jax.ShapeDtypeStruct((B, S, E), x.dtype),
        grid_spec=grid_spec,
        compiler_params=pltpu.CompilerParams(
            dimension_semantics=("parallel", "parallel", "arbitrary"),
            vmem_limit_bytes=48 * 1024 * 1024,
        ),
    )(x_bf16, x_bf16, w_qkv, w_o, b_qkv, b_o)


def _reference(x, params, num_heads):
    """Pure-JAX f32 reference matching torch.nn.MultiheadAttention forward."""
    B, S, E = x.shape
    H = num_heads
    Dh = E // H
    q = x @ params['wq'].T + params['bq']
    k = x @ params['wk'].T + params['bk']
    v = x @ params['wv'].T + params['bv']
    qh = q.reshape(B, S, H, Dh).transpose(0, 2, 1, 3)
    kh = k.reshape(B, S, H, Dh).transpose(0, 2, 1, 3)
    vh = v.reshape(B, S, H, Dh).transpose(0, 2, 1, 3)
    scores = jnp.einsum('bhqd,bhkd->bhqk', qh, kh) / jnp.sqrt(jnp.float32(Dh))
    p = jax.nn.softmax(scores, axis=-1)
    ctx = jnp.einsum('bhqk,bhkd->bhqd', p, vh).transpose(0, 2, 1, 3).reshape(B, S, E)
    return ctx @ params['wo'].T + params['bo']


def _make_params(key, E):
    """nn.MultiheadAttention-style params: in_proj (3E,E)+(3E,), out_proj (E,E)+(E,)."""
    kw, kb, ko = jax.random.split(key, 3)
    in_proj_w = jax.random.normal(kw, (3 * E, E), dtype=jnp.float32) * 0.05
    in_proj_b = jax.random.normal(kb, (3 * E,), dtype=jnp.float32) * 0.05
    out_proj_w = jax.random.normal(ko, (E, E), dtype=jnp.float32) * 0.05
    out_proj_b = jnp.zeros((E,), dtype=jnp.float32)
    return {
        'wq': in_proj_w[0 * E:1 * E], 'bq': in_proj_b[0 * E:1 * E],
        'wk': in_proj_w[1 * E:2 * E], 'bk': in_proj_b[1 * E:2 * E],
        'wv': in_proj_w[2 * E:3 * E], 'bv': in_proj_b[2 * E:3 * E],
        'wo': out_proj_w, 'bo': out_proj_b,
    }


if __name__ == "__main__":
    key = jax.random.PRNGKey(0)
    kp, kx1, kx2 = jax.random.split(key, 3)

    E, H = 32, 4
    params = _make_params(kp, E)

    # bf16 MXU matmuls with f32 accumulation -> compare against the f32 reference
    # with a correspondingly loosened tolerance.
    ATOL = RTOL = 2e-2

    # Test 1: tiny shape from the module spec (B=2, S=8, E=32, H=4) — single tile.
    x1 = jax.random.normal(kx1, (2, 8, E), dtype=jnp.float32)
    out1 = jax.block_until_ready(multi_head_self_attention(x1, params, num_heads=H))
    ref1 = _reference(x1, params, H)
    assert out1.shape == x1.shape
    assert jnp.allclose(out1, ref1, atol=ATOL, rtol=RTOL), "mismatch vs reference (S=8)"

    # Test 2: longer sequence to exercise the flash tiling / online softmax path.
    x2 = jax.random.normal(kx2, (2, 256, E), dtype=jnp.float32)
    out2 = jax.block_until_ready(multi_head_self_attention(x2, params, num_heads=H))
    ref2 = _reference(x2, params, H)
    assert out2.shape == x2.shape
    assert jnp.allclose(out2, ref2, atol=ATOL, rtol=RTOL), "mismatch vs reference (S=256)"

    print("KERNEL_OK")
</pallas_src>

<mosaic_0001>
module attributes {stable_mosaic.version = 11 : i64} {
  func.func @_mha_flash_kernel(%arg0: i32, %arg1: i32, %arg2: i32, %arg3: memref<1x8x32xbf16, #tpu.memory_space<vmem>>, %arg4: memref<1x8x32xbf16, #tpu.memory_space<vmem>>, %arg5: memref<32x96xbf16, #tpu.memory_space<vmem>>, %arg6: memref<32x32xbf16, #tpu.memory_space<vmem>>, %arg7: memref<1x96xf32, #tpu.memory_space<vmem>>, %arg8: memref<1x32xf32, #tpu.memory_space<vmem>>, %arg9: memref<1x8x32xf32, #tpu.memory_space<vmem>>, %arg10: memref<8x32xbf16, #tpu.memory_space<vmem>>, %arg11: memref<4x8x1xf32, #tpu.memory_space<vmem>>, %arg12: memref<4x8x1xf32, #tpu.memory_space<vmem>>, %arg13: memref<4x8x8xf32, #tpu.memory_space<vmem>>) attributes {dimension_semantics = [#tpu.dimension_semantics<parallel>, #tpu.dimension_semantics<parallel>, #tpu.dimension_semantics<arbitrary>], iteration_bounds = array<i64: 2, 1, 1>, scalar_prefetch = 0 : i64, scratch_operands = 4 : i64, tpu.core_type = #tpu.core_type<tc>, window_params = [{transform_indices = @transform_0, window_bounds = array<i64: 1, 8, 32>}, {transform_indices = @transform_1, window_bounds = array<i64: 1, 8, 32>}, {pipeline_mode = #tpu.pipeline_mode<synchronous>, transform_indices = @transform_2, window_bounds = array<i64: 32, 96>}, {pipeline_mode = #tpu.pipeline_mode<synchronous>, transform_indices = @transform_3, window_bounds = array<i64: 32, 32>}, {pipeline_mode = #tpu.pipeline_mode<synchronous>, transform_indices = @transform_4, window_bounds = array<i64: 1, 96>}, {pipeline_mode = #tpu.pipeline_mode<synchronous>, transform_indices = @transform_5, window_bounds = array<i64: 1, 32>}, {transform_indices = @transform_6, window_bounds = array<i64: 1, 8, 32>}]} {
    %c0_i32 = arith.constant 0 : i32
    %0 = arith.cmpi eq, %arg2, %c0_i32 : i32
    %1 = arith.extui %0 : i1 to i32
    %c0_i32_0 = arith.constant 0 : i32
    %2 = arith.cmpi ne, %1, %c0_i32_0 : i32
    scf.if %2 {
      %c0_95 = arith.constant 0 : index
      %c0_96 = arith.constant 0 : index
      %c0_97 = arith.constant 0 : index
      %162 = vector.load %arg3[%c0_95, %c0_96, %c0_97] : memref<1x8x32xbf16, #tpu.memory_space<vmem>>, vector<1x8x32xbf16>
      %163 = vector.shape_cast %162 : vector<1x8x32xbf16> to vector<8x32xbf16>
      %c0_98 = arith.constant 0 : index
      %c0_99 = arith.constant 0 : index
      %164 = vector.load %arg5[%c0_98, %c0_99] : memref<32x96xbf16, #tpu.memory_space<vmem>>, vector<32x32xbf16>
      %cst_100 = arith.constant dense<0.000000e+00> : vector<8x32xf32>
      %165 = tpu.matmul %163, %164, %cst_100 {dimension_numbers = #tpu.dot_dimension_numbers<[1], [0], [0], [1], [0, 0, 1, 1], [], []>} : vector<8x32xbf16>, vector<32x32xbf16>, vector<8x32xf32> -> vector<8x32xf32>
      %c0_101 = arith.constant 0 : index
      %c0_102 = arith.constant 0 : index
      %166 = vector.load %arg7[%c0_101, %c0_102] : memref<1x96xf32, #tpu.memory_space<vmem>>, vector<1x32xf32>
      %167 = vector.broadcast %166 : vector<1x32xf32> to vector<8x32xf32>
      %168 = arith.addf %165, %167 : vector<8x32xf32>
      %cst_103 = arith.constant 0.353553385 : f32
      %169 = vector.broadcast %cst_103 : f32 to vector<8x32xf32>
      %170 = arith.mulf %168, %169 : vector<8x32xf32>
      %171 = arith.truncf %170 : vector<8x32xf32> to vector<8x32xbf16>
      %c0_104 = arith.constant 0 : index
      %c0_105 = arith.constant 0 : index
      %172 = vector.load %arg10[%c0_104, %c0_105] : memref<8x32xbf16, #tpu.memory_space<vmem>>, vector<8x32xbf16>
      tpu.vector_store %arg10[%c0_104, %c0_105], %171 {strides = array<i32>} : memref<8x32xbf16, #tpu.memory_space<vmem>>, vector<8x32xbf16>,
      %cst_106 = arith.constant 0xFF800000 : f32
      %173 = vector.broadcast %cst_106 : f32 to vector<4x8x1xf32>
      %c0_107 = arith.constant 0 : index
      %c0_108 = arith.constant 0 : index
      %c0_109 = arith.constant 0 : index
      %174 = vector.load %arg11[%c0_107, %c0_108, %c0_109] : memref<4x8x1xf32, #tpu.memory_space<vmem>>, vector<4x8x1xf32>
      tpu.vector_store %arg11[%c0_107, %c0_108, %c0_109], %173 {strides = array<i32>} : memref<4x8x1xf32, #tpu.memory_space<vmem>>, vector<4x8x1xf32>,
      %cst_110 = arith.constant 0.000000e+00 : f32
      %175 = vector.broadcast %cst_110 : f32 to vector<4x8x1xf32>
      %c0_111 = arith.constant 0 : index
      %c0_112 = arith.constant 0 : index
      %c0_113 = arith.constant 0 : index
      %176 = vector.load %arg12[%c0_111, %c0_112, %c0_113] : memref<4x8x1xf32, #tpu.memory_space<vmem>>, vector<4x8x1xf32>
      tpu.vector_store %arg12[%c0_111, %c0_112, %c0_113], %175 {strides = array<i32>} : memref<4x8x1xf32, #tpu.memory_space<vmem>>, vector<4x8x1xf32>,
      %cst_114 = arith.constant 0.000000e+00 : f32
      %177 = vector.broadcast %cst_114 : f32 to vector<4x8x8xf32>
      %c0_115 = arith.constant 0 : index
      %c0_116 = arith.constant 0 : index
      %c0_117 = arith.constant 0 : index
      %178 = vector.load %arg13[%c0_115, %c0_116, %c0_117] : memref<4x8x8xf32, #tpu.memory_space<vmem>>, vector<4x8x8xf32>
      tpu.vector_store %arg13[%c0_115, %c0_116, %c0_117], %177 {strides = array<i32>} : memref<4x8x8xf32, #tpu.memory_space<vmem>>, vector<4x8x8xf32>,
    } else {
    }
    %c0 = arith.constant 0 : index
    %c0_1 = arith.constant 0 : index
    %c0_2 = arith.constant 0 : index
    %3 = vector.load %arg4[%c0, %c0_1, %c0_2] : memref<1x8x32xbf16, #tpu.memory_space<vmem>>, vector<1x8x32xbf16>
    %4 = vector.shape_cast %3 : vector<1x8x32xbf16> to vector<8x32xbf16>
    %c0_3 = arith.constant 0 : index
    %c32 = arith.constant 32 : index
    %5 = vector.load %arg5[%c0_3, %c32] : memref<32x96xbf16, #tpu.memory_space<vmem>>, vector<32x64xbf16>
    %cst = arith.constant dense<0.000000e+00> : vector<8x64xf32>
    %6 = tpu.matmul %4, %5, %cst {dimension_numbers = #tpu.dot_dimension_numbers<[1], [0], [0], [1], [0, 0, 1, 1], [], []>} : vector<8x32xbf16>, vector<32x64xbf16>, vector<8x64xf32> -> vector<8x64xf32>
    %c0_4 = arith.constant 0 : index
    %c32_5 = arith.constant 32 : index
    %7 = vector.load %arg7[%c0_4, %c32_5] : memref<1x96xf32, #tpu.memory_space<vmem>>, vector<1x64xf32>
    %8 = vector.broadcast %7 : vector<1x64xf32> to vector<8x64xf32>
    %9 = arith.addf %6, %8 : vector<8x64xf32>
    %10 = vector.extract_strided_slice %9 {offsets = [0, 0], sizes = [8, 32], strides = [1, 1]} : vector<8x64xf32> to vector<8x32xf32>
    %11 = arith.truncf %10 : vector<8x32xf32> to vector<8x32xbf16>
    %12 = vector.extract_strided_slice %9 {offsets = [0, 32], sizes = [8, 32], strides = [1, 1]} : vector<8x64xf32> to vector<8x32xf32>
    %13 = arith.truncf %12 : vector<8x32xf32> to vector<8x32xbf16>
    %c0_6 = arith.constant 0 : index
    %c0_7 = arith.constant 0 : index
    %14 = vector.load %arg10[%c0_6, %c0_7] : memref<8x32xbf16, #tpu.memory_space<vmem>>, vector<8x32xbf16>
    %15 = vector.extract_strided_slice %14 {offsets = [0, 0], sizes = [8, 8], strides = [1, 1]} : vector<8x32xbf16> to vector<8x8xbf16>
    %16 = vector.extract_strided_slice %11 {offsets = [0, 0], sizes = [8, 8], strides = [1, 1]} : vector<8x32xbf16> to vector<8x8xbf16>
    %17 = vector.extract_strided_slice %13 {offsets = [0, 0], sizes = [8, 8], strides = [1, 1]} : vector<8x32xbf16> to vector<8x8xbf16>
    %cst_8 = arith.constant dense<0.000000e+00> : vector<8x8xf32>
    %18 = tpu.matmul %15, %16, %cst_8 {dimension_numbers = #tpu.dot_dimension_numbers<[1], [1], [0], [0], [0, 0, 1, 0], [], []>} : vector<8x8xbf16>, vector<8x8xbf16>, vector<8x8xf32> -> vector<8x8xf32>
    %c0_9 = arith.constant 0 : index
    %c0_10 = arith.constant 0 : index
    %c0_11 = arith.constant 0 : index
    %19 = vector.load %arg11[%c0_9, %c0_10, %c0_11] : memref<4x8x1xf32, #tpu.memory_space<vmem>>, vector<1x8x1xf32>
    %20 = vector.shape_cast %19 : vector<1x8x1xf32> to vector<8x1xf32>
    %cst_12 = arith.constant dense<0xFF800000> : vector<8xf32>
    %21 = vector.multi_reduction <maximumf>, %18, %cst_12 [1] : vector<8x8xf32> to vector<8xf32>
    %22 = vector.shape_cast %21 : vector<8xf32> to vector<8x1xf32>
    %23 = arith.maximumf %20, %22 : vector<8x1xf32>
    %24 = arith.subf %20, %23 : vector<8x1xf32>
    %25 = math.exp %24 : vector<8x1xf32>
    %26 = vector.broadcast %23 : vector<8x1xf32> to vector<8x8xf32>
    %27 = arith.subf %18, %26 : vector<8x8xf32>
    %28 = math.exp %27 : vector<8x8xf32>
    %c0_13 = arith.constant 0 : index
    %c0_14 = arith.constant 0 : index
    %c0_15 = arith.constant 0 : index
    %29 = vector.load %arg12[%c0_13, %c0_14, %c0_15] : memref<4x8x1xf32, #tpu.memory_space<vmem>>, vector<1x8x1xf32>
    %30 = vector.shape_cast %29 : vector<1x8x1xf32> to vector<8x1xf32>
    %31 = arith.mulf %25, %30 : vector<8x1xf32>
    %cst_16 = arith.constant dense<0.000000e+00> : vector<8xf32>
    %32 = vector.multi_reduction <add>, %28, %cst_16 [1] : vector<8x8xf32> to vector<8xf32>
    %33 = vector.shape_cast %32 : vector<8xf32> to vector<8x1xf32>
    %34 = arith.addf %31, %33 : vector<8x1xf32>
    %c0_17 = arith.constant 0 : index
    %c0_18 = arith.constant 0 : index
    %c0_19 = arith.constant 0 : index
    %35 = vector.load %arg12[%c0_17, %c0_18, %c0_19] : memref<4x8x1xf32, #tpu.memory_space<vmem>>, vector<1x8x1xf32>
    %36 = vector.shape_cast %35 : vector<1x8x1xf32> to vector<8x1xf32>
    %37 = vector.shape_cast %34 : vector<8x1xf32> to vector<1x8x1xf32>
    tpu.vector_store %arg12[%c0_17, %c0_18, %c0_19], %37 {strides = array<i32>} : memref<4x8x1xf32, #tpu.memory_space<vmem>>, vector<1x8x1xf32>,
    %c0_20 = arith.constant 0 : index
    %c0_21 = arith.constant 0 : index
    %c0_22 = arith.constant 0 : index
    %38 = vector.load %arg13[%c0_20, %c0_21, %c0_22] : memref<4x8x8xf32, #tpu.memory_space<vmem>>, vector<1x8x8xf32>
    %39 = vector.shape_cast %38 : vector<1x8x8xf32> to vector<8x8xf32>
    %40 = vector.broadcast %25 : vector<8x1xf32> to vector<8x8xf32>
    %41 = arith.mulf %40, %39 : vector<8x8xf32>
    %42 = arith.truncf %28 : vector<8x8xf32> to vector<8x8xbf16>
    %cst_23 = arith.constant dense<0.000000e+00> : vector<8x8xf32>
    %43 = tpu.matmul %42, %17, %cst_23 {dimension_numbers = #tpu.dot_dimension_numbers<[1], [0], [0], [1], [0, 0, 1, 1], [], []>} : vector<8x8xbf16>, vector<8x8xbf16>, vector<8x8xf32> -> vector<8x8xf32>
    %44 = arith.addf %41, %43 : vector<8x8xf32>
    %c0_24 = arith.constant 0 : index
    %c0_25 = arith.constant 0 : index
    %c0_26 = arith.constant 0 : index
    %45 = vector.load %arg13[%c0_24, %c0_25, %c0_26] : memref<4x8x8xf32, #tpu.memory_space<vmem>>, vector<1x8x8xf32>
    %46 = vector.shape_cast %45 : vector<1x8x8xf32> to vector<8x8xf32>
    %47 = vector.shape_cast %44 : vector<8x8xf32> to vector<1x8x8xf32>
    tpu.vector_store %arg13[%c0_24, %c0_25, %c0_26], %47 {strides = array<i32>} : memref<4x8x8xf32, #tpu.memory_space<vmem>>, vector<1x8x8xf32>,
    %c0_27 = arith.constant 0 : index
    %c0_28 = arith.constant 0 : index
    %c0_29 = arith.constant 0 : index
    %48 = vector.load %arg11[%c0_27, %c0_28, %c0_29] : memref<4x8x1xf32, #tpu.memory_space<vmem>>, vector<1x8x1xf32>
    %49 = vector.shape_cast %48 : vector<1x8x1xf32> to vector<8x1xf32>
    %50 = vector.shape_cast %23 : vector<8x1xf32> to vector<1x8x1xf32>
    tpu.vector_store %arg11[%c0_27, %c0_28, %c0_29], %50 {strides = array<i32>} : memref<4x8x1xf32, #tpu.memory_space<vmem>>, vector<1x8x1xf32>,
    %51 = vector.extract_strided_slice %14 {offsets = [0, 8], sizes = [8, 8], strides = [1, 1]} : vector<8x32xbf16> to vector<8x8xbf16>
    %52 = vector.extract_strided_slice %11 {offsets = [0, 8], sizes = [8, 8], strides = [1, 1]} : vector<8x32xbf16> to vector<8x8xbf16>
    %53 = vector.extract_strided_slice %13 {offsets = [0, 8], sizes = [8, 8], strides = [1, 1]} : vector<8x32xbf16> to vector<8x8xbf16>
    %cst_30 = arith.constant dense<0.000000e+00> : vector<8x8xf32>
    %54 = tpu.matmul %51, %52, %cst_30 {dimension_numbers = #tpu.dot_dimension_numbers<[1], [1], [0], [0], [0, 0, 1, 0], [], []>} : vector<8x8xbf16>, vector<8x8xbf16>, vector<8x8xf32> -> vector<8x8xf32>
    %c1 = arith.constant 1 : index
    %c0_31 = arith.constant 0 : index
    %c0_32 = arith.constant 0 : index
    %55 = vector.load %arg11[%c1, %c0_31, %c0_32] : memref<4x8x1xf32, #tpu.memory_space<vmem>>, vector<1x8x1xf32>
    %56 = vector.shape_cast %55 : vector<1x8x1xf32> to vector<8x1xf32>
    %cst_33 = arith.constant dense<0xFF800000> : vector<8xf32>
    %57 = vector.multi_reduction <maximumf>, %54, %cst_33 [1] : vector<8x8xf32> to vector<8xf32>
    %58 = vector.shape_cast %57 : vector<8xf32> to vector<8x1xf32>
    %59 = arith.maximumf %56, %58 : vector<8x1xf32>
    %60 = arith.subf %56, %59 : vector<8x1xf32>
    %61 = math.exp %60 : vector<8x1xf32>
    %62 = vector.broadcast %59 : vector<8x1xf32> to vector<8x8xf32>
    %63 = arith.subf %54, %62 : vector<8x8xf32>
    %64 = math.exp %63 : vector<8x8xf32>
    %c1_34 = arith.constant 1 : index
    %c0_35 = arith.constant 0 : index
    %c0_36 = arith.constant 0 : index
    %65 = vector.load %arg12[%c1_34, %c0_35, %c0_36] : memref<4x8x1xf32, #tpu.memory_space<vmem>>, vector<1x8x1xf32>
    %66 = vector.shape_cast %65 : vector<1x8x1xf32> to vector<8x1xf32>
    %67 = arith.mulf %61, %66 : vector<8x1xf32>
    %cst_37 = arith.constant dense<0.000000e+00> : vector<8xf32>
    %68 = vector.multi_reduction <add>, %64, %cst_37 [1] : vector<8x8xf32> to vector<8xf32>
    %69 = vector.shape_cast %68 : vector<8xf32> to vector<8x1xf32>
    %70 = arith.addf %67, %69 : vector<8x1xf32>
    %c1_38 = arith.constant 1 : index
    %c0_39 = arith.constant 0 : index
    %c0_40 = arith.constant 0 : index
    %71 = vector.load %arg12[%c1_38, %c0_39, %c0_40] : memref<4x8x1xf32, #tpu.memory_space<vmem>>, vector<1x8x1xf32>
    %72 = vector.shape_cast %71 : vector<1x8x1xf32> to vector<8x1xf32>
    %73 = vector.shape_cast %70 : vector<8x1xf32> to vector<1x8x1xf32>
    tpu.vector_store %arg12[%c1_38, %c0_39, %c0_40], %73 {strides = array<i32>} : memref<4x8x1xf32, #tpu.memory_space<vmem>>, vector<1x8x1xf32>,
    %c1_41 = arith.constant 1 : index
    %c0_42 = arith.constant 0 : index
    %c0_43 = arith.constant 0 : index
    %74 = vector.load %arg13[%c1_41, %c0_42, %c0_43] : memref<4x8x8xf32, #tpu.memory_space<vmem>>, vector<1x8x8xf32>
    %75 = vector.shape_cast %74 : vector<1x8x8xf32> to vector<8x8xf32>
    %76 = vector.broadcast %61 : vector<8x1xf32> to vector<8x8xf32>
    %77 = arith.mulf %76, %75 : vector<8x8xf32>
    %78 = arith.truncf %64 : vector<8x8xf32> to vector<8x8xbf16>
    %cst_44 = arith.constant dense<0.000000e+00> : vector<8x8xf32>
    %79 = tpu.matmul %78, %53, %cst_44 {dimension_numbers = #tpu.dot_dimension_numbers<[1], [0], [0], [1], [0, 0, 1, 1], [], []>} : vector<8x8xbf16>, vector<8x8xbf16>, vector<8x8xf32> -> vector<8x8xf32>
    %80 = arith.addf %77, %79 : vector<8x8xf32>
    %c1_45 = arith.constant 1 : index
    %c0_46 = arith.constant 0 : index
    %c0_47 = arith.constant 0 : index
    %81 = vector.load %arg13[%c1_45, %c0_46, %c0_47] : memref<4x8x8xf32, #tpu.memory_space<vmem>>, vector<1x8x8xf32>
    %82 = vector.shape_cast %81 : vector<1x8x8xf32> to vector<8x8xf32>
    %83 = vector.shape_cast %80 : vector<8x8xf32> to vector<1x8x8xf32>
    tpu.vector_store %arg13[%c1_45, %c0_46, %c0_47], %83 {strides = array<i32>} : memref<4x8x8xf32, #tpu.memory_space<vmem>>, vector<1x8x8xf32>,
    %c1_48 = arith.constant 1 : index
    %c0_49 = arith.constant 0 : index
    %c0_50 = arith.constant 0 : index
    %84 = vector.load %arg11[%c1_48, %c0_49, %c0_50] : memref<4x8x1xf32, #tpu.memory_space<vmem>>, vector<1x8x1xf32>
    %85 = vector.shape_cast %84 : vector<1x8x1xf32> to vector<8x1xf32>
    %86 = vector.shape_cast %59 : vector<8x1xf32> to vector<1x8x1xf32>
    tpu.vector_store %arg11[%c1_48, %c0_49, %c0_50], %86 {strides = array<i32>} : memref<4x8x1xf32, #tpu.memory_space<vmem>>, vector<1x8x1xf32>,
    %87 = vector.extract_strided_slice %14 {offsets = [0, 16], sizes = [8, 8], strides = [1, 1]} : vector<8x32xbf16> to vector<8x8xbf16>
    %88 = vector.extract_strided_slice %11 {offsets = [0, 16], sizes = [8, 8], strides = [1, 1]} : vector<8x32xbf16> to vector<8x8xbf16>
    %89 = vector.extract_strided_slice %13 {offsets = [0, 16], sizes = [8, 8], strides = [1, 1]} : vector<8x32xbf16> to vector<8x8xbf16>
    %cst_51 = arith.constant dense<0.000000e+00> : vector<8x8xf32>
    %90 = tpu.matmul %87, %88, %cst_51 {dimension_numbers = #tpu.dot_dimension_numbers<[1], [1], [0], [0], [0, 0, 1, 0], [], []>} : vector<8x8xbf16>, vector<8x8xbf16>, vector<8x8xf32> -> vector<8x8xf32>
    %c2 = arith.constant 2 : index
    %c0_52 = arith.constant 0 : index
    %c0_53 = arith.constant 0 : index
    %91 = vector.load %arg11[%c2, %c0_52, %c0_53] : memref<4x8x1xf32, #tpu.memory_space<vmem>>, vector<1x8x1xf32>
    %92 = vector.shape_cast %91 : vector<1x8x1xf32> to vector<8x1xf32>
    %cst_54 = arith.constant dense<0xFF800000> : vector<8xf32>
    %93 = vector.multi_reduction <maximumf>, %90, %cst_54 [1] : vector<8x8xf32> to vector<8xf32>
    %94 = vector.shape_cast %93 : vector<8xf32> to vector<8x1xf32>
    %95 = arith.maximumf %92, %94 : vector<8x1xf32>
    %96 = arith.subf %92, %95 : vector<8x1xf32>
    %97 = math.exp %96 : vector<8x1xf32>
    %98 = vector.broadcast %95 : vector<8x1xf32> to vector<8x8xf32>
    %99 = arith.subf %90, %98 : vector<8x8xf32>
    %100 = math.exp %99 : vector<8x8xf32>
    %c2_55 = arith.constant 2 : index
    %c0_56 = arith.constant 0 : index
    %c0_57 = arith.constant 0 : index
    %101 = vector.load %arg12[%c2_55, %c0_56, %c0_57] : memref<4x8x1xf32, #tpu.memory_space<vmem>>, vector<1x8x1xf32>
    %102 = vector.shape_cast %101 : vector<1x8x1xf32> to vector<8x1xf32>
    %103 = arith.mulf %97, %102 : vector<8x1xf32>
    %cst_58 = arith.constant dense<0.000000e+00> : vector<8xf32>
    %104 = vector.multi_reduction <add>, %100, %cst_58 [1] : vector<8x8xf32> to vector<8xf32>
    %105 = vector.shape_cast %104 : vector<8xf32> to vector<8x1xf32>
    %106 = arith.addf %103, %105 : vector<8x1xf32>
    %c2_59 = arith.constant 2 : index
    %c0_60 = arith.constant 0 : index
    %c0_61 = arith.constant 0 : index
    %107 = vector.load %arg12[%c2_59, %c0_60, %c0_61] : memref<4x8x1xf32, #tpu.memory_space<vmem>>, vector<1x8x1xf32>
    %108 = vector.shape_cast %107 : vector<1x8x1xf32> to vector<8x1xf32>
    %109 = vector.shape_cast %106 : vector<8x1xf32> to vector<1x8x1xf32>
    tpu.vector_store %arg12[%c2_59, %c0_60, %c0_61], %109 {strides = array<i32>} : memref<4x8x1xf32, #tpu.memory_space<vmem>>, vector<1x8x1xf32>,
    %c2_62 = arith.constant 2 : index
    %c0_63 = arith.constant 0 : index
    %c0_64 = arith.constant 0 : index
    %110 = vector.load %arg13[%c2_62, %c0_63, %c0_64] : memref<4x8x8xf32, #tpu.memory_space<vmem>>, vector<1x8x8xf32>
    %111 = vector.shape_cast %110 : vector<1x8x8xf32> to vector<8x8xf32>
    %112 = vector.broadcast %97 : vector<8x1xf32> to vector<8x8xf32>
    %113 = arith.mulf %112, %111 : vector<8x8xf32>
    %114 = arith.truncf %100 : vector<8x8xf32> to vector<8x8xbf16>
    %cst_65 = arith.constant dense<0.000000e+00> : vector<8x8xf32>
    %115 = tpu.matmul %114, %89, %cst_65 {dimension_numbers = #tpu.dot_dimension_numbers<[1], [0], [0], [1], [0, 0, 1, 1], [], []>} : vector<8x8xbf16>, vector<8x8xbf16>, vector<8x8xf32> -> vector<8x8xf32>
    %116 = arith.addf %113, %115 : vector<8x8xf32>
    %c2_66 = arith.constant 2 : index
    %c0_67 = arith.constant 0 : index
    %c0_68 = arith.constant 0 : index
    %117 = vector.load %arg13[%c2_66, %c0_67, %c0_68] : memref<4x8x8xf32, #tpu.memory_space<vmem>>, vector<1x8x8xf32>
    %118 = vector.shape_cast %117 : vector<1x8x8xf32> to vector<8x8xf32>
    %119 = vector.shape_cast %116 : vector<8x8xf32> to vector<1x8x8xf32>
    tpu.vector_store %arg13[%c2_66, %c0_67, %c0_68], %119 {strides = array<i32>} : memref<4x8x8xf32, #tpu.memory_space<vmem>>, vector<1x8x8xf32>,
    %c2_69 = arith.constant 2 : index
    %c0_70 = arith.constant 0 : index
    %c0_71 = arith.constant 0 : index
    %120 = vector.load %arg11[%c2_69, %c0_70, %c0_71] : memref<4x8x1xf32, #tpu.memory_space<vmem>>, vector<1x8x1xf32>
    %121 = vector.shape_cast %120 : vector<1x8x1xf32> to vector<8x1xf32>
    %122 = vector.shape_cast %95 : vector<8x1xf32> to vector<1x8x1xf32>
    tpu.vector_store %arg11[%c2_69, %c0_70, %c0_71], %122 {strides = array<i32>} : memref<4x8x1xf32, #tpu.memory_space<vmem>>, vector<1x8x1xf32>,
    %123 = vector.extract_strided_slice %14 {offsets = [0, 24], sizes = [8, 8], strides = [1, 1]} : vector<8x32xbf16> to vector<8x8xbf16>
    %124 = vector.extract_strided_slice %11 {offsets = [0, 24], sizes = [8, 8], strides = [1, 1]} : vector<8x32xbf16> to vector<8x8xbf16>
    %125 = vector.extract_strided_slice %13 {offsets = [0, 24], sizes = [8, 8], strides = [1, 1]} : vector<8x32xbf16> to vector<8x8xbf16>
    %cst_72 = arith.constant dense<0.000000e+00> : vector<8x8xf32>
    %126 = tpu.matmul %123, %124, %cst_72 {dimension_numbers = #tpu.dot_dimension_numbers<[1], [1], [0], [0], [0, 0, 1, 0], [], []>} : vector<8x8xbf16>, vector<8x8xbf16>, vector<8x8xf32> -> vector<8x8xf32>
    %c3 = arith.constant 3 : index
    %c0_73 = arith.constant 0 : index
    %c0_74 = arith.constant 0 : index
    %127 = vector.load %arg11[%c3, %c0_73, %c0_74] : memref<4x8x1xf32, #tpu.memory_space<vmem>>, vector<1x8x1xf32>
    %128 = vector.shape_cast %127 : vector<1x8x1xf32> to vector<8x1xf32>
    %cst_75 = arith.constant dense<0xFF800000> : vector<8xf32>
    %129 = vector.multi_reduction <maximumf>, %126, %cst_75 [1] : vector<8x8xf32> to vector<8xf32>
    %130 = vector.shape_cast %129 : vector<8xf32> to vector<8x1xf32>
    %131 = arith.maximumf %128, %130 : vector<8x1xf32>
    %132 = arith.subf %128, %131 : vector<8x1xf32>
    %133 = math.exp %132 : vector<8x1xf32>
    %134 = vector.broadcast %131 : vector<8x1xf32> to vector<8x8xf32>
    %135 = arith.subf %126, %134 : vector<8x8xf32>
    %136 = math.exp %135 : vector<8x8xf32>
    %c3_76 = arith.constant 3 : index
    %c0_77 = arith.constant 0 : index
    %c0_78 = arith.constant 0 : index
    %137 = vector.load %arg12[%c3_76, %c0_77, %c0_78] : memref<4x8x1xf32, #tpu.memory_space<vmem>>, vector<1x8x1xf32>
    %138 = vector.shape_cast %137 : vector<1x8x1xf32> to vector<8x1xf32>
    %139 = arith.mulf %133, %138 : vector<8x1xf32>
    %cst_79 = arith.constant dense<0.000000e+00> : vector<8xf32>
    %140 = vector.multi_reduction <add>, %136, %cst_79 [1] : vector<8x8xf32> to vector<8xf32>
    %141 = vector.shape_cast %140 : vector<8xf32> to vector<8x1xf32>
    %142 = arith.addf %139, %141 : vector<8x1xf32>
    %c3_80 = arith.constant 3 : index
    %c0_81 = arith.constant 0 : index
    %c0_82 = arith.constant 0 : index
    %143 = vector.load %arg12[%c3_80, %c0_81, %c0_82] : memref<4x8x1xf32, #tpu.memory_space<vmem>>, vector<1x8x1xf32>
    %144 = vector.shape_cast %143 : vector<1x8x1xf32> to vector<8x1xf32>
    %145 = vector.shape_cast %142 : vector<8x1xf32> to vector<1x8x1xf32>
    tpu.vector_store %arg12[%c3_80, %c0_81, %c0_82], %145 {strides = array<i32>} : memref<4x8x1xf32, #tpu.memory_space<vmem>>, vector<1x8x1xf32>,
    %c3_83 = arith.constant 3 : index
    %c0_84 = arith.constant 0 : index
    %c0_85 = arith.constant 0 : index
    %146 = vector.load %arg13[%c3_83, %c0_84, %c0_85] : memref<4x8x8xf32, #tpu.memory_space<vmem>>, vector<1x8x8xf32>
    %147 = vector.shape_cast %146 : vector<1x8x8xf32> to vector<8x8xf32>
    %148 = vector.broadcast %133 : vector<8x1xf32> to vector<8x8xf32>
    %149 = arith.mulf %148, %147 : vector<8x8xf32>
    %150 = arith.truncf %136 : vector<8x8xf32> to vector<8x8xbf16>
    %cst_86 = arith.constant dense<0.000000e+00> : vector<8x8xf32>
    %151 = tpu.matmul %150, %125, %cst_86 {dimension_numbers = #tpu.dot_dimension_numbers<[1], [0], [0], [1], [0, 0, 1, 1], [], []>} : vector<8x8xbf16>, vector<8x8xbf16>, vector<8x8xf32> -> vector<8x8xf32>
    %152 = arith.addf %149, %151 : vector<8x8xf32>
    %c3_87 = arith.constant 3 : index
    %c0_88 = arith.constant 0 : index
    %c0_89 = arith.constant 0 : index
    %153 = vector.load %arg13[%c3_87, %c0_88, %c0_89] : memref<4x8x8xf32, #tpu.memory_space<vmem>>, vector<1x8x8xf32>
    %154 = vector.shape_cast %153 : vector<1x8x8xf32> to vector<8x8xf32>
    %155 = vector.shape_cast %152 : vector<8x8xf32> to vector<1x8x8xf32>
    tpu.vector_store %arg13[%c3_87, %c0_88, %c0_89], %155 {strides = array<i32>} : memref<4x8x8xf32, #tpu.memory_space<vmem>>, vector<1x8x8xf32>,
    %c3_90 = arith.constant 3 : index
    %c0_91 = arith.constant 0 : index
    %c0_92 = arith.constant 0 : index
    %156 = vector.load %arg11[%c3_90, %c0_91, %c0_92] : memref<4x8x1xf32, #tpu.memory_space<vmem>>, vector<1x8x1xf32>
    %157 = vector.shape_cast %156 : vector<1x8x1xf32> to vector<8x1xf32>
    %158 = vector.shape_cast %131 : vector<8x1xf32> to vector<1x8x1xf32>
    tpu.vector_store %arg11[%c3_90, %c0_91, %c0_92], %158 {strides = array<i32>} : memref<4x8x1xf32, #tpu.memory_space<vmem>>, vector<1x8x1xf32>,
    %c0_i32_93 = arith.constant 0 : i32
    %159 = arith.cmpi eq, %arg2, %c0_i32_93 : i32
    %160 = arith.extui %159 : i1 to i32
    %c0_i32_94 = arith.constant 0 : i32
    %161 = arith.cmpi ne, %160, %c0_i32_94 : i32
    scf.if %161 {
      %c0_95 = arith.constant 0 : index
      %c0_96 = arith.constant 0 : index
      %c0_97 = arith.constant 0 : index
      %162 = vector.load %arg13[%c0_95, %c0_96, %c0_97] : memref<4x8x8xf32, #tpu.memory_space<vmem>>, vector<1x8x8xf32>
      %163 = vector.shape_cast %162 : vector<1x8x8xf32> to vector<8x8xf32>
      %c0_98 = arith.constant 0 : index
      %c0_99 = arith.constant 0 : index
      %c0_100 = arith.constant 0 : index
      %164 = vector.load %arg12[%c0_98, %c0_99, %c0_100] : memref<4x8x1xf32, #tpu.memory_space<vmem>>, vector<1x8x1xf32>
      %165 = vector.shape_cast %164 : vector<1x8x1xf32> to vector<8x1xf32>
      %166 = tpu.reciprocal %165 {approx = true} : vector<8x1xf32> -> vector<8x1xf32>
      %167 = vector.broadcast %166 : vector<8x1xf32> to vector<8x8xf32>
      %168 = arith.mulf %163, %167 : vector<8x8xf32>
      %c1_101 = arith.constant 1 : index
      %c0_102 = arith.constant 0 : index
      %c0_103 = arith.constant 0 : index
      %169 = vector.load %arg13[%c1_101, %c0_102, %c0_103] : memref<4x8x8xf32, #tpu.memory_space<vmem>>, vector<1x8x8xf32>
      %170 = vector.shape_cast %169 : vector<1x8x8xf32> to vector<8x8xf32>
      %c1_104 = arith.constant 1 : index
      %c0_105 = arith.constant 0 : index
      %c0_106 = arith.constant 0 : index
      %171 = vector.load %arg12[%c1_104, %c0_105, %c0_106] : memref<4x8x1xf32, #tpu.memory_space<vmem>>, vector<1x8x1xf32>
      %172 = vector.shape_cast %171 : vector<1x8x1xf32> to vector<8x1xf32>
      %173 = tpu.reciprocal %172 {approx = true} : vector<8x1xf32> -> vector<8x1xf32>
      %174 = vector.broadcast %173 : vector<8x1xf32> to vector<8x8xf32>
      %175 = arith.mulf %170, %174 : vector<8x8xf32>
      %c2_107 = arith.constant 2 : index
      %c0_108 = arith.constant 0 : index
      %c0_109 = arith.constant 0 : index
      %176 = vector.load %arg13[%c2_107, %c0_108, %c0_109] : memref<4x8x8xf32, #tpu.memory_space<vmem>>, vector<1x8x8xf32>
      %177 = vector.shape_cast %176 : vector<1x8x8xf32> to vector<8x8xf32>
      %c2_110 = arith.constant 2 : index
      %c0_111 = arith.constant 0 : index
      %c0_112 = arith.constant 0 : index
      %178 = vector.load %arg12[%c2_110, %c0_111, %c0_112] : memref<4x8x1xf32, #tpu.memory_space<vmem>>, vector<1x8x1xf32>
      %179 = vector.shape_cast %178 : vector<1x8x1xf32> to vector<8x1xf32>
      %180 = tpu.reciprocal %179 {approx = true} : vector<8x1xf32> -> vector<8x1xf32>
      %181 = vector.broadcast %180 : vector<8x1xf32> to vector<8x8xf32>
      %182 = arith.mulf %177, %181 : vector<8x8xf32>
      %c3_113 = arith.constant 3 : index
      %c0_114 = arith.constant 0 : index
      %c0_115 = arith.constant 0 : index
      %183 = vector.load %arg13[%c3_113, %c0_114, %c0_115] : memref<4x8x8xf32, #tpu.memory_space<vmem>>, vector<1x8x8xf32>
      %184 = vector.shape_cast %183 : vector<1x8x8xf32> to vector<8x8xf32>
      %c3_116 = arith.constant 3 : index
      %c0_117 = arith.constant 0 : index
      %c0_118 = arith.constant 0 : index
      %185 = vector.load %arg12[%c3_116, %c0_117, %c0_118] : memref<4x8x1xf32, #tpu.memory_space<vmem>>, vector<1x8x1xf32>
      %186 = vector.shape_cast %185 : vector<1x8x1xf32> to vector<8x1xf32>
      %187 = tpu.reciprocal %186 {approx = true} : vector<8x1xf32> -> vector<8x1xf32>
      %188 = vector.broadcast %187 : vector<8x1xf32> to vector<8x8xf32>
      %189 = arith.mulf %184, %188 : vector<8x8xf32>
      %190 = tpu.concatenate %168, %175, %182, %189 in 1 : vector<8x8xf32>, vector<8x8xf32>, vector<8x8xf32>, vector<8x8xf32> -> vector<8x32xf32>
      %191 = arith.truncf %190 : vector<8x32xf32> to vector<8x32xbf16>
      %c0_119 = arith.constant 0 : index
      %c0_120 = arith.constant 0 : index
      %192 = vector.load %arg6[%c0_119, %c0_120] : memref<32x32xbf16, #tpu.memory_space<vmem>>, vector<32x32xbf16>
      %cst_121 = arith.constant dense<0.000000e+00> : vector<8x32xf32>
      %193 = tpu.matmul %191, %192, %cst_121 {dimension_numbers = #tpu.dot_dimension_numbers<[1], [0], [0], [1], [0, 0, 1, 1], [], []>} : vector<8x32xbf16>, vector<32x32xbf16>, vector<8x32xf32> -> vector<8x32xf32>
      %c0_122 = arith.constant 0 : index
      %c0_123 = arith.constant 0 : index
      %194 = vector.load %arg8[%c0_122, %c0_123] : memref<1x32xf32, #tpu.memory_space<vmem>>, vector<1x32xf32>
      %195 = vector.broadcast %194 : vector<1x32xf32> to vector<8x32xf32>
      %196 = arith.addf %193, %195 : vector<8x32xf32>
      %c0_124 = arith.constant 0 : index
      %c0_125 = arith.constant 0 : index
      %c0_126 = arith.constant 0 : index
      %197 = vector.load %arg9[%c0_124, %c0_125, %c0_126] : memref<1x8x32xf32, #tpu.memory_space<vmem>>, vector<1x8x32xf32>
      %198 = vector.shape_cast %197 : vector<1x8x32xf32> to vector<8x32xf32>
      %199 = vector.shape_cast %196 : vector<8x32xf32> to vector<1x8x32xf32>
      tpu.vector_store %arg9[%c0_124, %c0_125, %c0_126], %199 {strides = array<i32>} : memref<1x8x32xf32, #tpu.memory_space<vmem>>, vector<1x8x32xf32>,
    } else {
    }
    return
  }
  func.func @transform_0(%arg0: i32, %arg1: i32, %arg2: i32) -> (i32, i32, i32) {
    %c0_i32 = arith.constant 0 : i32
    %c0_i32_0 = arith.constant 0 : i32
    return %arg0, %arg1, %c0_i32 : i32, i32, i32
  }
  func.func @transform_1(%arg0: i32, %arg1: i32, %arg2: i32) -> (i32, i32, i32) {
    %c0_i32 = arith.constant 0 : i32
    %c0_i32_0 = arith.constant 0 : i32
    return %arg0, %arg2, %c0_i32 : i32, i32, i32
  }
  func.func @transform_2(%arg0: i32, %arg1: i32, %arg2: i32) -> (i32, i32) {
    %c0_i32 = arith.constant 0 : i32
    %c0_i32_0 = arith.constant 0 : i32
    %c0_i32_1 = arith.constant 0 : i32
    return %c0_i32, %c0_i32_0 : i32, i32
  }
  func.func @transform_3(%arg0: i32, %arg1: i32, %arg2: i32) -> (i32, i32) {
    %c0_i32 = arith.constant 0 : i32
    %c0_i32_0 = arith.constant 0 : i32
    %c0_i32_1 = arith.constant 0 : i32
    return %c0_i32, %c0_i32_0 : i32, i32
  }
  func.func @transform_4(%arg0: i32, %arg1: i32, %arg2: i32) -> (i32, i32) {
    %c0_i32 = arith.constant 0 : i32
    %c0_i32_0 = arith.constant 0 : i32
    %c0_i32_1 = arith.constant 0 : i32
    return %c0_i32, %c0_i32_0 : i32, i32
  }
  func.func @transform_5(%arg0: i32, %arg1: i32, %arg2: i32) -> (i32, i32) {
    %c0_i32 = arith.constant 0 : i32
    %c0_i32_0 = arith.constant 0 : i32
    %c0_i32_1 = arith.constant 0 : i32
    return %c0_i32, %c0_i32_0 : i32, i32
  }
  func.func @transform_6(%arg0: i32, %arg1: i32, %arg2: i32) -> (i32, i32, i32) {
    %c0_i32 = arith.constant 0 : i32
    %c0_i32_0 = arith.constant 0 : i32
    return %arg0, %arg1, %c0_i32 : i32, i32, i32
  }
}

</mosaic_0001>

<bundles_post_ra>
// kernel: tpu_custom_call.1
= control target key start
LH: loop header
LB: loop body
LE: loop exit
PB: predicated region body
PF: predicated region fallthrough
CT: control target
= control target key end

     0   :  { %s2312_s0 = inlined_call_operand.hbm [shape: bf16[2,8,32], index: 0, kind: input, shape index: {}]   ;;  %s2313_s1 = inlined_call_operand.hbm [shape: bf16[2,8,32], index: 1, kind: input, shape index: {}]   ;;  %s2314_s2 = inlined_call_operand.hbm [shape: bf16[32,96], index: 2, kind: input, shape index: {}]   ;;  %s2315_s3 = inlined_call_operand.hbm [shape: bf16[32,32], index: 3, kind: input, shape index: {}]   ;;  %s2316_s4 = inlined_call_operand.vmem [shape: f32[1,96], index: 4, kind: input, shape index: {}]   ;;  %s2317_s5 = inlined_call_operand.vmem [shape: f32[1,32], index: 5, kind: input, shape index: {}]   ;;  %s2318_s6 = inlined_call_operand.hbm [shape: f32[2,8,32], index: 6, kind: output, shape index: {}]  }
   0x1   :  { %2325 = sst [smem:[#allocation23_spill]] %s2314_s2 }
   0x2   :  { %2326 = sst [smem:[#allocation24_spill]] %s2315_s3 }
   0x3   :  { %11 = vsyncpa [#allocation7], 0 }
   0x4   :  { %13 = vsyncpa [#allocation7 + $0x1], 0 }
   0x5   :  { %14 = vsyncpa [#allocation10], 0 }
   0x6   :  { %16 = vsyncpa [#allocation10 + $0x1], 0 }
   0x7   :  { %17 = vsyncpa [#allocation13], 0 }
   0x8   :  { %18 = vsyncpa [#allocation8], 0 }
   0x9   :  { %20 = vsyncpa [#allocation8 + $0x1], 0  ;;  %s1875_s21 = smov 0   ;;  %s1877_s22 = smov 0  }
   0xa   :  { %s1879_s23 = smov 0   ;;  %s1881_s24 = smov 0  }
   0xb   :  { %s1883_s25 = smov 0   ;;  %s1885_s26 = smov 0  }
   0xc LB: > { %2327 = sst [smem:[#allocation20_spill]] %s1813_s25  ;;  %s1906_s27 = sadd.s32 4294967295, %s1817_s26   ;;  %s1817_s26 = sphi %s1885_s26, %s26_s26   ;;  %s1813_s25 = sphi %s1883_s25, %s2350_s25   ;;  %s1809_s24 = sphi %s1881_s24, %s2349_s24   ;;  %s1805_s23 = sphi %s1879_s23, %s2353_s23   ;;  %s1801_s22 = sphi %s1877_s22, %s2352_s22   ;;  %s1797_s21 = sphi %s1875_s21, %s2351_s21  }
   0xd   : > { %s1333_s28 = sadd.s32 4294967294, %s1817_s26   ;;  %p67_p0 = scmp.ne.s32.totalorder %s1801_s22, %s1797_s21 }
   0xe   : > { %p2319_p1 = scmp.eq.s32.totalorder %s1906_s27, 0  ;;  %p211_p3 = scmp.eq.s32.totalorder %s1333_s28, 1 }
   0xf   : > { %p1334_p5 = scmp.ge.s32.totalorder %s1817_s26, 1  ;;  %p218_p7 = scmp.lt.s32.totalorder %s1817_s26, 3 }
  0x10   : > { %p1915_p4 = por %p2319_p1, %p67_p0  ;;  %p1920_p6 = por %p211_p3, %p67_p0 }
  0x11   : > { %p1925_p8 = pnand %p1334_p5, %p218_p7  ;;  %s1819_s8 = smov [#allocation11]  }
  0x12   : > { %s2328_s29 = scalar_select %p1915_p4, 1, 0 }
  0x13   : > { %s2329_s30 = scalar_select %p1920_p6, 1, 0 }
  0x14   : > { %s2330_s7 = scalar_select %p1925_p8, 1, 0 }
  0x15   : > { %s230_s9 = sshll.u32 %s1819_s8, 4  ;;  %p1484_p9 = pneg %p1925_p8  ;;  %s1929_s9 = int_to_ptr.vmem [resolvable:$true] %s230_s9 }
  0x16   : > { %s1820_s11 = smov [#allocation12]   ;;  %s2332_s2 = sld [smem:[#allocation23_spill]] }
  0x17   : > { %p1936_p11 = pnand %p1484_p9, %p2319_p1  ;;  %s243_s12 = sshll.u32 %s1820_s11, 4  ;;  %s1940_s12 = int_to_ptr.vmem [resolvable:$true] %s243_s12 }
  0x19   : > { %p1609_p13 = pneg %p1936_p11 }
  0x1c   : > { %s1607_s15 = scalar_lea.hbm %s2332_s2, 256 }
  0x1d   : > { %p1608_p12 = scmp.ne.s32.totalorder %s2332_s2, %s1607_s15  ;;  %p1614_p5 = scmp.lt.u32.totalorder %s1607_s15, %s2332_s2 }
  0x1f   : > { %p1610_p0 = pnand %p1609_p13, %p1608_p12 }
  0x21   : > { %p1611_p3 = pneg %p1610_p0 }
  0x23   : > { %p1616_p7 = pnand %p1614_p5, %p1611_p3 }
  0x25   : > { %1619 = shalt.err (!%p1616_p7)
}
  0x26   : > { %s1620_s20 = scalar_lea.vmem %s1929_s9, 256  ;;  %p1628_p2 = scmp.lt.s32.totalorder %s1929_s9, %s1929_s9 }
  0x27   : > { %p1621_p9 = scmp.ne.s32.totalorder %s1929_s9, %s1620_s20  ;;  %p1629_p12 = scmp.lt.s32.totalorder %s1620_s20, %s1620_s20 }
  0x29   : > { %p1623_p10 = pnand %p1621_p9, %p1609_p13  ;;  %p1630_p0 = por %p1629_p12, %p1628_p2 }
  0x2b   : > { %p1624_p1 = pneg %p1623_p10 }
  0x2d   : > { %p1631_p6 = pnand %p1630_p0, %p1624_p1 }
  0x2f   : > { %1634 = shalt.err (!%p1631_p6)
}
  0x30   : > { %s1821_s28 = smov 64   ;;  %s1822_s8 = smov 4  }
  0x31   : > { %1487 = dma.hbm_to_vmem [thread:$0]  (!%p1936_p11), %s2332_s2, 256, %s1929_s9, [#allocation10], %s1821_s28, %s1821_s28, %s1822_s8  }
  0x32   : > { %s2333_s3 = sld [smem:[#allocation24_spill]] }
  0x38   : > { %s1635_s16 = scalar_lea.hbm %s2333_s3, 256 }
  0x39   : > { %p1636_p2 = scmp.ne.s32.totalorder %s2333_s3, %s1635_s16  ;;  %p1642_p10 = scmp.lt.u32.totalorder %s1635_s16, %s2333_s3 }
  0x3b   : > { %p1638_p1 = pnand %p1636_p2, %p1609_p13 }
  0x3d   : > { %p1639_p6 = pneg %p1638_p1 }
  0x3f   : > { %p1644_p3 = pnand %p1642_p10, %p1639_p6 }
  0x41   : > { %1647 = shalt.err (!%p1644_p3)
}
  0x42   : > { %s1648_s9 = scalar_lea.vmem %s1940_s12, 256  ;;  %p1656_p12 = scmp.lt.s32.totalorder %s1940_s12, %s1940_s12 }
  0x43   : > { %p1649_p5 = scmp.ne.s32.totalorder %s1940_s12, %s1648_s9  ;;  %p1657_p0 = scmp.lt.s32.totalorder %s1648_s9, %s1648_s9 }
  0x45   : > { %p1651_p7 = pnand %p1649_p5, %p1609_p13  ;;  %p1658_p2 = por %p1657_p0, %p1656_p12 }
  0x47   : > { %p1652_p9 = pneg %p1651_p7 }
  0x49   : > { %p1659_p1 = pnand %p1658_p2, %p1652_p9 }
  0x4b   : > { %1662 = shalt.err (!%p1659_p1)
}
  0x4c   : > { %1490 = dma.hbm_to_vmem [thread:$0]  (!%p1936_p11), %s2333_s3, 256, %s1940_s12, [#allocation13], %s1821_s28, %s1821_s28, %s1822_s8  }
  0x4d   : > { %s45_s14 = sadd.s32 1, %s1813_s25  ;;  %s54_s15 = sadd.s32 1, %s1805_s23 }
  0x4e   : > { %p47_p13 = scmp.ge.s32.totalorder %s45_s14, 2  ;;  %p61_p6 = scmp.ne.s32.totalorder %s1805_s23, %s1801_s22 }
  0x4f   : > { %p62_p10 = scmp.eq.s32.totalorder %s1817_s26, 0  ;;  %p1504_p3 = scmp.lt.s32.totalorder %s1817_s26, 2 }
  0x50   : > { %s2355_s14 = smov (%p47_p13, %s45_s14), 0  ;;  %p2335_p7 = scmp.eq.s32.totalorder %s1906_s27, 1 }
  0x51   : > { %2334 = sst [smem:[#allocation21_spill]] %s2355_s14  ;;  %p63_p5 = por %p62_p10, %p61_p6 }
  0x52   : > { %p2004_p9 = por %p2335_p7, %p61_p6  ;;  %s49_s16 = ssub.s32 %s1813_s25, %s2355_s14 }
  0x53   : > { %s263_s17 = sand.u32 1, %s1805_s23   ;;  %p52_p12 = scmp.eq.s32.totalorder %s49_s16, 0 }
  0x54   : > { %s2336_s10 = scalar_select %p2004_p9, 1, 0 }
  0x55   : > { %s2011_s12 = sshll.u32 %s263_s17, 2  ;;  %s1339_s28 = sshll.u32 %s1813_s25, 6 }
  0x56   : > { %s2015_s8 = scalar_select %p52_p12, %s1805_s23, %s54_s15  }
  0x57   : > { %s2020_s20 = scalar_lea.hbm %s2312_s0, %s1339_s28  ;;  %s267_s9 = scalar_lea.vmem [#allocation6], %s2011_s12 }
  0x58   : > { %2337 = sst [smem:[#allocation22_spill]] %s2015_s8  ;;  %s275_s11 = sshll.u32 %s267_s9, 4  ;;  %s2029_s11 = int_to_ptr.vmem [resolvable:$true] %s275_s11 }
  0x59   : > { %p2025_p11 = pnand %p1504_p3, %p63_p5  ;;  %s2034_s18 = scalar_lea.hbm %s2313_s1, %s1339_s28 }
  0x5a   : > { %s264_s19 = scalar_lea.sflag [#allocation7], %s263_s17  ;;  %s1663_s2 = scalar_lea.hbm %s2020_s20, 64 }
  0x5b   : > { %p1664_p0 = scmp.ne.s32.totalorder %s2020_s20, %s1663_s2  ;;  %p1665_p2 = pneg %p2025_p11 }
  0x5c   : > { %s1668_s14 = scalar_lea.hbm %s2312_s0, 128  ;;  %p1669_p6 = scmp.lt.u32.totalorder %s2020_s20, %s2312_s0 }
  0x5d   : > { %p1666_p1 = pnand %p1665_p2, %p1664_p0  ;;  %p1670_p10 = scmp.lt.u32.totalorder %s1668_s14, %s1663_s2 }
  0x5e   : > { %p1672_p5 = scmp.lt.u32.totalorder %s1663_s2, %s2020_s20 }
  0x5f   : > { %p1667_p13 = pneg %p1666_p1  ;;  %p1671_p3 = por %p1670_p10, %p1669_p6 }
  0x61   : > { %p1673_p7 = por %p1672_p5, %p1671_p3 }
  0x63   : > { %p1674_p12 = pnand %p1673_p7, %p1667_p13 }
  0x65   : > { %1677 = shalt.err (!%p1674_p12)
}
  0x66   : > { %s1678_s17 = scalar_lea.vmem %s2029_s11, 64  ;;  %s1823_s3 = smov [#allocation6]  }
  0x67   : > { %p1679_p0 = scmp.ne.s32.totalorder %s2029_s11, %s1678_s17  ;;  %s1683_s28 = sshll.u32 %s1823_s3, 4  ;;  %s1684_s28 = int_to_ptr.vmem [resolvable:$false] %s1683_s28 }
  0x68   : > { %s1685_s25 = scalar_lea.vmem %s1684_s28, 128  ;;  %p1686_p4 = scmp.lt.s32.totalorder %s2029_s11, %s1684_s28 }
  0x69   : > { %p1681_p1 = pnand %p1679_p0, %p1665_p2  ;;  %p1687_p6 = scmp.lt.s32.totalorder %s1685_s25, %s1678_s17 }
  0x6b   : > { %p1682_p9 = pneg %p1681_p1  ;;  %p1688_p10 = por %p1687_p6, %p1686_p4 }
  0x6d   : > { %p1689_p3 = pnand %p1688_p10, %p1682_p9 }
  0x6f   : > { %1692 = shalt.err (!%p1689_p3)
}
  0x70   : > { %1494 = dma.hbm_to_vmem [thread:$0]  (!%p2025_p11), %s2020_s20, 64, %s2029_s11, %s264_s19  }
  0x71   : > { %s282_s2 = sand.u32 1, %s1817_s26   ;;  %s286_s14 = scalar_lea.vmem [#allocation9], %s2011_s12 }
  0x72   : > { %s294_s8 = sshll.u32 %s286_s14, 4  ;;  %s283_s15 = scalar_lea.sflag [#allocation10], %s282_s2  ;;  %s295_s8 = int_to_ptr.vmem [resolvable:$true] %s294_s8 }
  0x73   : > { %s1693_s16 = scalar_lea.hbm %s2034_s18, 64  ;;  %s1698_s3 = scalar_lea.hbm %s2313_s1, 128 }
  0x74   : > { %p1694_p4 = scmp.ne.s32.totalorder %s2034_s18, %s1693_s16  ;;  %p1699_p5 = scmp.lt.u32.totalorder %s2034_s18, %s2313_s1 }
  0x75   : > { %p1700_p7 = scmp.lt.u32.totalorder %s1698_s3, %s1693_s16  ;;  %p1702_p0 = scmp.lt.u32.totalorder %s1693_s16, %s2034_s18 }
  0x76   : > { %p1696_p9 = pnand %p1694_p4, %p1665_p2 }
  0x77   : > { %p1701_p12 = por %p1700_p7, %p1699_p5 }
  0x78   : > { %p1697_p13 = pneg %p1696_p9 }
  0x79   : > { %p1703_p1 = por %p1702_p0, %p1701_p12 }
  0x7b   : > { %p1704_p6 = pnand %p1703_p1, %p1697_p13 }
  0x7d   : > { %1707 = shalt.err (!%p1704_p6)
}
  0x7e   : > { %s1708_s12 = scalar_lea.vmem %s295_s8, 64  ;;  %s1824_s20 = smov [#allocation9]  }
  0x7f   : > { %p1709_p10 = scmp.ne.s32.totalorder %s295_s8, %s1708_s12  ;;  %s1713_s11 = sshll.u32 %s1824_s20, 4  ;;  %s1714_s11 = int_to_ptr.vmem [resolvable:$false] %s1713_s11 }
  0x80   : > { %s1715_s19 = scalar_lea.vmem %s1714_s11, 128  ;;  %p1716_p9 = scmp.lt.s32.totalorder %s295_s8, %s1714_s11 }
  0x81   : > { %p1711_p3 = pnand %p1709_p10, %p1665_p2  ;;  %p1717_p8 = scmp.lt.s32.totalorder %s1715_s19, %s1708_s12 }
  0x83   : > { %p1712_p4 = pneg %p1711_p3  ;;  %p1718_p5 = por %p1717_p8, %p1716_p9 }
  0x85   : > { %p1719_p7 = pnand %p1718_p5, %p1712_p4 }
  0x87   : > { %1722 = shalt.err (!%p1719_p7)
}
  0x88   : > { %1497 = dma.hbm_to_vmem [thread:$0]  (!%p2025_p11), %s2034_s18, 64, %s295_s8, %s283_s15  }
  0x89   : > { %p2339_p13 = scmp.ne.s32.totalorder %s2330_s7, 0 }
  0x8a   : > { %s2085_s2 = sand.u32 (!%p2339_p13), 1, %s1801_s22   ;;  %p2340_p2 = scmp.ne.s32.totalorder (!%p2339_p13), %s2328_s29, 0 }
  0x8b   : > { %303 = sbr.rel (%p2339_p13) target bundleno = 1776 (0x6f0), region = 44  ;;  %s1343_s14 = sshll.u32 (!%p2339_p13), %s2085_s2, 2 }
  0x8c   : > { %s306_s16 = scalar_lea.sflag (!%p2339_p13), [#allocation7], %s2085_s2  ;;  %s309_s9 = scalar_lea.vmem (!%p2339_p13), [#allocation6], %s1343_s14 }
  0x92   : > { %1776 = dma.done.wait (%p2340_p2), %s306_s16, 64  }
  0x93   : > { %1778 = vsyncadd (%p2340_p2), %s306_s16, 4294967232  ;;  %s314_s13 = sand.u32 1, %s1906_s27   ;;  %s2094_s7 = scalar_lea.vmem [#allocation9], %s1343_s14 }
  0x94   : > { %s315_s18 = scalar_lea.sflag [#allocation10], %s314_s13 }
  0x95   : > { %1780 = dma.done.wait (%p2340_p2), %s315_s18, 64  }
  0x96   : > { %1782 = vsyncadd (%p2340_p2), %s315_s18, 4294967232  ;;  %p2341_p8 = scmp.eq.s32.totalorder %s1906_s27, 0 }
  0x98   : > { %1784 = dma.done.wait (%p2341_p8), [#allocation10], 256   ;;  %p2342_p11 = pmov %p2341_p8 }
  0x99   : > { %p2343_p12 = pmov %p2341_p8 }
  0x9a   : > { %1786 = vsyncadd (%p2342_p11), [#allocation10], 4294967040 }
  0x9b   : > { %1788 = dma.done.wait (%p2343_p12), [#allocation13], 256   ;;  %p2344_p0 = pmov %p2341_p8 }
  0x9c   : > { %v1825_v0 = vmov 0.0   ;;  %vm1826_vm0 = vmmov 0   ;;  %v1576_v1 = vld [vmem:[#allocation11] sm:$0xff]   ;;  %v1577_v2 = vld [vmem:[#allocation11 + $0x8] sm:$0xff]   ;;  %s1827_s29 = smov 96   ;;  %vm389_vm1 = vcmask 261120  }
  0x9d   : > { %1790 = vsyncadd (%p2344_p0), [#allocation13], 4294967040  ;;  %1398 = vmatprep.subr.bf16.mxu0 %v1825_v0  ;;  %1402 = vmatprep.mubr.msk.bf16.mxu0 %vm1826_vm0, %v1825_v0  ;;  %v1578_v3 = vld [vmem:[#allocation11] sm:$0xff]   ;;  %v1579_v4 = vld [vmem:[#allocation11 + $0x8] sm:$0xff]   ;;  %vm446_vm2 = vcmask 64512   ;;  %vm435_vm3 = vcmask 257024  }
  0x9e   : > { %1406 = vmatprep.subr.bf16.mxu1 %v1825_v0  ;;  %1410 = vmatprep.mubr.msk.bf16.mxu1 %vm1826_vm0, %v1825_v0  ;;  %v1352_v5 = vld [vmem:[%s2316_s4] ss:$0 sm:$0xff]  ;;  %v365_v6 = vld [vmem:[%s309_s9] sm:$0xf]  ;;  %v451_v9 = vld [vmem:[%s2094_s7] sm:$0xf] }
  0x9f   : > { %472 = vrot.lane.b32.xlu0 %v1576_v1, %s1827_s29  ;;  %1399 = vmatpush3.bf16.msra.mxu0 %v1578_v3  ;;  %447 = vst.msk [vmem:[#allocation5] sm:$0xff] %vm446_vm2, %v1825_v0  ;;  %448 = vst.msk [vmem:[#allocation5 + $0x8] sm:$0xff] %vm446_vm2, %v1825_v0  ;;  %s1828_s15 = smov 120   ;;  %s1829_s17 = smov 112   ;;  %vm437_vm4 = vcmask 7168   ;;  %v1831_v41 = vmov -inf  }
  0xa0   : > { %1400 = vmatprep.subr.bf16.mxu0 %v1825_v0  ;;  %478 = vrot.lane.b32.xlu1 %v1352_v5, %s1827_s29  ;;  %449 = vst.msk [vmem:[#allocation5 + $0x10] sm:$0xff] %vm446_vm2, %v1825_v0  ;;  %450 = vst.msk [vmem:[#allocation5 + $0x18] sm:$0xff] %vm446_vm2, %v1825_v0  ;;  %s1830_s3 = smov 104   ;;  %v1832_v42 = vmov 0   ;;  %s1833_s28 = smov 88   ;;  %vm612_vm5 = vcmask 1043456  }
  0xa1   : > { %438 = vst.msk [vmem:[#allocation3] sm:$0xff] %vm437_vm4, %v1831_v41  ;;  %439 = vst.msk [vmem:[#allocation3 + $0x8] sm:$0xff] %vm437_vm4, %v1831_v41  ;;  %1574 = vset.pattern.permute.xlu0 %v1832_v42  ;;  %1575 = vset.pattern.permute.xlu1 %v1832_v42  ;;  %s1834_s25 = smov 80   ;;  %s1835_s12 = smov 72   ;;  %vm1119_vm6 = vcmask 130048   ;;  %vm1121_vm7 = vcmask 195584  }
  0xa2   : > { %440 = vst.msk [vmem:[#allocation3 + $0x10] sm:$0xff] %vm437_vm4, %v1831_v41  ;;  %441 = vst.msk [vmem:[#allocation3 + $0x18] sm:$0xff] %vm437_vm4, %v1831_v41  ;;  %s1836_s20 = smov 8   ;;  %s1837_s11 = smov 16  }
  0xa3   : > { %474 = vrot.lane.b32.xlu0 %v1577_v2, %s1827_s29  ;;  %1401 = vmatpush3.bf16.msra.mxu0 %v1579_v4  ;;  %442 = vst.msk [vmem:[#allocation4] sm:$0xff] %vm437_vm4, %v1825_v0  ;;  %443 = vst.msk [vmem:[#allocation4 + $0x8] sm:$0xff] %vm437_vm4, %v1825_v0  ;;  %s1838_s19 = smov 24   ;;  %s1347_s14 = sshll.u32 %s2085_s2, 3 }
  0xa4   : > { %1414 = vmatprep.subr.bf16.mxu0 %v1825_v0  ;;  %444 = vst.msk [vmem:[#allocation4 + $0x10] sm:$0xff] %vm437_vm4, %v1825_v0  ;;  %445 = vst.msk [vmem:[#allocation4 + $0x18] sm:$0xff] %vm437_vm4, %v1825_v0  ;;  %s1370_s13 = sshll.u32 %s1809_s24, 7  ;;  %s359_s18 = scalar_lea.vmem [#allocation14], %s1347_s14 }
  0xa5   : > { %s1206_s7 = sshll.u32 %s359_s18, 4  ;;  %s2262_s8 = scalar_lea.hbm %s2318_s6, %s1370_s13  ;;  %s2264_s7 = int_to_ptr.vmem [resolvable:$true] %s1206_s7 }
  0xa6   : > { %1403 = vmatmul.mubr.msk.bf16.vlgmr.msra.gmra.mrb[0].mxu0 %vm389_vm1, %v365_v6  ;;  %s1192_s24 = scalar_lea.sflag [#allocation8], %s2085_s2  ;;  %p2345_p6 = scmp.ne.s32.totalorder %s2336_s10, 0 }
  0xa7   : > { %1416 = vmatprep.mubr.msk.bf16.mxu0 %vm1826_vm0, %v1825_v0 }
  0xa8   : > { %v2187_v58 = vld [vmem:[#allocation3] sm:$0xff]  ;;  %v2197_v62 = vld [vmem:[#allocation3 + $0x8] sm:$0xff] }
  0xa9   : > { %v848_v3 = vld [vmem:[#allocation3 + $0x10] sm:$0xff] }
 0x111   : > { %v473_v7 = vpop.permute.xlu0 %472 }
 0x112   : > { %1407 = vmatpush3.bf16.msra.mxu1 %v473_v7  ;;  %v479_v19 = vpop.permute.xlu1 %478  ;;  %v983_v7 = vld [vmem:[#allocation3 + $0x18] sm:$0xff] }
 0x113   : > { %1408 = vmatprep.subr.bf16.mxu1 %v1825_v0 }
 0x115   : > { %v475_v8 = vpop.permute.xlu0 %474 }
 0x116   : > { %1409 = vmatpush3.bf16.msra.mxu1 %v475_v8 }
 0x117   : > { %1420 = vmatprep.subr.bf16.mxu1 %v1825_v0 }
 0x119   : > { %1411 = vmatmul.mubr.msk.bf16.vlgmr.msra.gmra.mrb[0].mxu1 %vm389_vm1, %v451_v9 }
 0x11a   : > { %1422 = vmatprep.mubr.msk.bf16.mxu1 %vm1826_vm0, %v1825_v0 }
 0x179   : > { %v427_v10 = vpop.f32.mrb[0].mxu0 }
 0x17a   : > { %v428_v11 = vadd.f32 %v1352_v5, %v427_v10  ;;  %v1404_v12 = vpop.f32.mrb[1].mxu0 }
 0x17b   : > { %v430_v13 = vpop.f32.mrb[2].mxu0 }
 0x17c   : > { %v433_v14 = vmul.f32 0.35355338, %v428_v11  ;;  %v1405_v15 = vpop.f32.mrb[3].mxu0 }
 0x17e   : > { %v434_v16 = vpack.c.bf16 %v433_v14, %v433_v14 }
 0x180   : > { %436 = vst.msk [vmem:[#allocation2] sm:$0xf] %vm435_vm3, %v434_v16 }
 0x187   : > { %v526_v17 = vld [vmem:[#allocation2] sm:$0xf] }
 0x188   : > { %v1358_v18 = vcombine.low %v526_v17, %v526_v17 }
 0x18a   : > { %662 = vrot.lane.b32.xlu0 %v1358_v18, %s1828_s15 }
 0x18e   : > { %797 = vrot.lane.b32.xlu0 %v1358_v18, %s1829_s17 }
 0x192   : > { %932 = vrot.lane.b32.xlu0 %v1358_v18, %s1830_s3 }
 0x1ec   : > { %v519_v20 = vpop.f32.mrb[0].mxu1 }
 0x1ed   : > { %v520_v21 = vadd.f32 %v519_v20, %v479_v19  ;;  %v1412_v22 = vpop.f32.mrb[1].mxu1 }
 0x1ee   : > { %v522_v23 = vpop.f32.mrb[2].mxu1 }
 0x1ef   : > { %v2139_v24 = vpack.c.bf16 %v520_v21, %v520_v21  ;;  %v1413_v25 = vpop.f32.mrb[3].mxu1 }
 0x1f1   : > { %664 = vrot.lane.b32.xlu1 %v2139_v24, %s1828_s15  ;;  %v532_v26 = vsel %vm446_vm2, %v2139_v24, 0  ;;  %s1723_s15 = scalar_lea.vmem %s2264_s7, 128 }
 0x1f2   : > { %1415 = vmatpush3.bf16.xpose.msra.mxu0 %v532_v26  ;;  %p1724_p1 = scmp.ne.s32.totalorder %s2264_s7, %s1723_s15 }
 0x1f3   : > { %1426 = vmatprep.subr.bf16.mxu0 %v1825_v0 }
 0x1f4   : > { %p1725_p10 = pnand %p1724_p1, %p2345_p6 }
 0x1f5   : > { %799 = vrot.lane.b32.xlu1 %v2139_v24, %s1829_s17  ;;  %s1839_s17 = smov [#allocation14]  }
 0x1f6   : > { %p1726_p3 = pneg %p1725_p10 }
 0x1f9   : > { %934 = vrot.lane.b32.xlu1 %v2139_v24, %s1830_s3  ;;  %1417 = vmatmul.mubr.msk.bf16.vlgmr.msra.gmra.mrb[4].mxu0 %vm446_vm2, %v526_v17  ;;  %s1727_s3 = sshll.u32 %s1839_s17, 4  ;;  %s1728_s3 = int_to_ptr.vmem [resolvable:$false] %s1727_s3 }
 0x1fa   : > { %1428 = vmatprep.mubr.msk.bf16.mxu0 %vm1826_vm0, %v1825_v0  ;;  %p1730_p4 = scmp.lt.s32.totalorder %s2264_s7, %s1728_s3 }
 0x1fc   : > { %v663_v30 = vpop.permute.xlu0 %662 }
 0x200   : > { %v798_v33 = vpop.permute.xlu0 %797 }
 0x204   : > { %v933_v35 = vpop.permute.xlu0 %932 }
 0x263   : > { %v665_v27 = vpop.permute.xlu1 %664 }
 0x264   : > { %v670_v28 = vsel %vm446_vm2, %v665_v27, 0 }
 0x265   : > { %1427 = vmatpush3.bf16.xpose.msra.mxu0 %v670_v28 }
 0x266   : > { %1438 = vmatprep.subr.bf16.mxu0 %v1825_v0 }
 0x267   : > { %v800_v29 = vpop.permute.xlu1 %799 }
 0x268   : > { %v805_v31 = vsel %vm446_vm2, %v800_v29, 0 }
 0x26b   : > { %v935_v32 = vpop.permute.xlu1 %934 }
 0x26c   : > { %1429 = vmatmul.mubr.msk.bf16.vlgmr.msra.gmra.mrb[8].mxu0 %vm446_vm2, %v663_v30  ;;  %v940_v34 = vsel %vm446_vm2, %v935_v32, 0 }
 0x26d   : > { %1439 = vmatpush3.bf16.xpose.msra.mxu0 %v805_v31  ;;  %1440 = vmatprep.mubr.msk.bf16.mxu0 %vm1826_vm0, %v1825_v0 }
 0x26e   : > { %1450 = vmatprep.subr.bf16.mxu0 %v1825_v0 }
 0x274   : > { %1441 = vmatmul.mubr.msk.bf16.vlgmr.msra.gmra.mrb[12].mxu0 %vm446_vm2, %v798_v33 }
 0x275   : > { %1451 = vmatpush3.bf16.xpose.msra.mxu0 %v940_v34  ;;  %1452 = vmatprep.mubr.msk.bf16.mxu0 %vm1826_vm0, %v1825_v0 }
 0x276   : > { %1462 = vmatprep.subr.bf16.mxu0 %v1825_v0 }
 0x27c   : > { %1453 = vmatmul.mubr.msk.bf16.vlgmr.msra.gmra.mrb[16].mxu0 %vm446_vm2, %v933_v35 }
 0x27d   : > { %1466 = vmatprep.mubr.msk.bf16.mxu0 %vm1826_vm0, %v1825_v0 }
 0x2cc   : > { %v2165_v36 = vpop.f32.mrb[4].mxu0 }
 0x2cd   : > { %v1418_v37 = vpop.f32.mrb[5].mxu0  ;;  %v575_v38 = vsel %vm446_vm2, %v2165_v36, -inf }
 0x2ce   : > { %576 = vmax.xlane.f32.xlu1 %v575_v38  ;;  %v571_v39 = vpop.f32.mrb[6].mxu0 }
 0x2cf   : > { %v1419_v40 = vpop.f32.mrb[7].mxu0 }
 0x33f   : > { %v706_v43 = vpop.f32.mrb[8].mxu0 }
 0x340   : > { %v1430_v44 = vpop.f32.mrb[9].mxu0  ;;  %v714_v45 = vsel %vm446_vm2, %v706_v43, -inf }
 0x341   : > { %715 = vmax.xlane.f32.xlu0 %v714_v45  ;;  %v709_v46 = vpop.f32.mrb[10].mxu0 }
 0x342   : > { %v1431_v47 = vpop.f32.mrb[11].mxu0 }
 0x347   : > { %v841_v48 = vpop.f32.mrb[12].mxu0 }
 0x348   : > { %v1442_v49 = vpop.f32.mrb[13].mxu0  ;;  %v849_v50 = vsel %vm446_vm2, %v841_v48, -inf }
 0x349   : > { %850 = vmax.xlane.f32.xlu0 %v849_v50  ;;  %v844_v51 = vpop.f32.mrb[14].mxu0  ;;  %v730_v50 = vld [vmem:[#allocation4 + $0x8] sm:$0xff] }
 0x34a   : > { %v1443_v52 = vpop.f32.mrb[15].mxu0 }
 0x34f   : > { %v2183_v53 = vpop.f32.mrb[16].mxu0 }
 0x350   : > { %v1454_v54 = vpop.f32.mrb[17].mxu0  ;;  %v984_v55 = vsel %vm446_vm2, %v2183_v53, -inf }
 0x351   : > { %985 = vmax.xlane.f32.xlu1 %v984_v55  ;;  %v979_v56 = vpop.f32.mrb[18].mxu0  ;;  %v590_v54 = vld [vmem:[#allocation4] sm:$0xff] }
 0x352   : > { %v1455_v57 = vpop.f32.mrb[19].mxu0 }
 0x35b   : > { %v577_v59 = vpop.xlane.xlu1 %576 }
 0x35c   : > { %v2190_v60 = vmax.f32 %v2187_v58, %v577_v59  ;;  %v865_v59 = vld [vmem:[#allocation4 + $0x10] sm:$0xff] }
 0x35e   : > { %v579_v61 = vsub.f32 %v2187_v58, %v2190_v60  ;;  %658 = vst.msk [vmem:[#allocation3] sm:$0xff] %vm437_vm4, %v2190_v60 }
 0x35f   : > { %584 = vperm.xlu0 %1574, %v2190_v60   ;;  %v1000_v60 = vld [vmem:[#allocation4 + $0x18] sm:$0xff] }
 0x360   : > { %v580_v49 = vmul.f32 1.442695, %v579_v61 }
 0x3ce   : > { %v716_v63 = vpop.xlane.xlu0 %715 }
 0x3cf   : > { %v2200_v1 = vmax.f32 %v2197_v62, %v716_v63 }
 0x3d1   : > { %v718_v2 = vsub.f32 %v2197_v62, %v2200_v1  ;;  %796 = vst.msk [vmem:[#allocation3 + $0x8] sm:$0xff] %vm437_vm4, %v2200_v1  ;;  %723 = vperm.xlu1 %1575, %v2200_v1  }
 0x3d3   : > { %v719_v46 = vmul.f32 1.442695, %v718_v2 }
 0x3d6   : > { %v851_v4 = vpop.xlane.xlu0 %850 }
 0x3d7   : > { %v852_v5 = vmax.f32 %v848_v3, %v851_v4 }
 0x3d9   : > { %v853_v6 = vsub.f32 %v848_v3, %v852_v5  ;;  %931 = vst.msk [vmem:[#allocation3 + $0x10] sm:$0xff] %vm437_vm4, %v852_v5  ;;  %858 = vperm.xlu1 %1575, %v852_v5  }
 0x3db   : > { %v854_v33 = vmul.f32 1.442695, %v853_v6 }
 0x3dd   : > { %607 = vrot.lane.b32.xlu1 %v2139_v24, %s1827_s29 }
 0x3de   : > { %v986_v8 = vpop.xlane.xlu1 %985  ;;  %v585_v11 = vpop.permute.xlu0 %584 }
 0x3df   : > { %v987_v9 = vmax.f32 %v983_v7, %v986_v8  ;;  %v587_v12 = vsub.f32 %v2165_v36, %v585_v11 }
 0x3e1   : > { %v988_v10 = vsub.f32 %v983_v7, %v987_v9  ;;  %1066 = vst.msk [vmem:[#allocation3 + $0x18] sm:$0xff] %vm437_vm4, %v987_v9  ;;  %993 = vperm.xlu1 %1575, %v987_v9   ;;  %v588_v13 = vmul.f32 1.442695, %v587_v12 }
 0x3e3   : > { %1583 = vpow2.f32 %v588_v13  ;;  %v989_v38 = vmul.f32 1.442695, %v988_v10 }
 0x3e5   : > { %746 = vrot.lane.b32.xlu1 %v2139_v24, %s1833_s28  ;;  %s1729_s28 = scalar_lea.vmem %s1728_s3, 256 }
 0x3e6   : > { %p1731_p9 = scmp.lt.s32.totalorder %s1729_s28, %s1723_s15 }
 0x3e8   : > { %p1732_p5 = por %p1731_p9, %p1730_p4 }
 0x3e9   : > { %881 = vrot.lane.b32.xlu1 %v2139_v24, %s1834_s25 }
 0x3ea   : > { %p1733_p7 = pnand %p1732_p5, %p1726_p3 }
 0x3ed   : > { %1016 = vrot.lane.b32.xlu1 %v2139_v24, %s1835_s12  ;;  %v1584_v20 = vpop.eup %1583 }
 0x3ee   : > { %v605_v24 = vpack.c.bf16 %v1584_v20, %v1584_v20  ;;  %v592_v30 = vsel %vm446_vm2, %v1584_v20, 0.0 }
 0x450   : > { %v724_v14 = vpop.permute.xlu1 %723 }
 0x451   : > { %v726_v15 = vsub.f32 %v706_v43, %v724_v14 }
 0x453   : > { %v727_v16 = vmul.f32 1.442695, %v726_v15 }
 0x455   : > { %1585 = vpow2.f32 %v727_v16  ;;  %v738_v16 = vld [vmem:[#allocation5 + $0x8] sm:$0xff] }
 0x458   : > { %v859_v17 = vpop.permute.xlu1 %858 }
 0x459   : > { %v861_v18 = vsub.f32 %v841_v48, %v859_v17 }
 0x45b   : > { %v862_v19 = vmul.f32 1.442695, %v861_v18 }
 0x45c   : > { %v608_v21 = vpop.permute.xlu1 %607 }
 0x45d   : > { %1587 = vpow2.f32 %v862_v19  ;;  %v614_v22 = vsel %vm612_vm5, %v608_v21, 0 }
 0x45e   : > { %1421 = vmatpush3.bf16.msra.mxu1 %v614_v22 }
 0x45f   : > { %v1586_v23 = vpop.eup %1585  ;;  %1432 = vmatprep.subr.bf16.mxu1 %v1825_v0 }
 0x460   : > { %v994_v25 = vpop.permute.xlu1 %993  ;;  %v732_v26 = vsel %vm446_vm2, %v1586_v23, 0.0  ;;  %v745_v34 = vpack.c.bf16 %v1586_v23, %v1586_v23 }
 0x461   : > { %v996_v27 = vsub.f32 %v2183_v53, %v994_v25  ;;  %733 = vadd.xlane.f32.xlu1 %v732_v26  ;;  %1423 = vmatmul.mubr.msk.bf16.vlgmr.msra.gmra.mrb[4].mxu1 %vm446_vm2, %v605_v24  ;;  %v873_v24 = vld [vmem:[#allocation5 + $0x10] sm:$0xff] }
 0x462   : > { %1434 = vmatprep.mubr.msk.bf16.mxu1 %vm1826_vm0, %v1825_v0 }
 0x463   : > { %v997_v28 = vmul.f32 1.442695, %v996_v27 }
 0x464   : > { %v747_v29 = vpop.permute.xlu1 %746 }
 0x465   : > { %1589 = vpow2.f32 %v997_v28  ;;  %v752_v31 = vsel %vm612_vm5, %v747_v29, 0  ;;  %593 = vadd.xlane.f32.xlu1 %v592_v30 }
 0x466   : > { %1433 = vmatpush3.bf16.msra.mxu1 %v752_v31  ;;  %1591 = vpow2.f32 %v854_v33 }
 0x467   : > { %v1588_v32 = vpop.eup %1587  ;;  %1444 = vmatprep.subr.bf16.mxu1 %v1825_v0  ;;  %1593 = vpow2.f32 %v989_v38 }
 0x468   : > { %v882_v35 = vpop.permute.xlu1 %881  ;;  %v867_v36 = vsel %vm446_vm2, %v1588_v32, 0.0  ;;  %v880_v41 = vpack.c.bf16 %v1588_v32, %v1588_v32  ;;  %1595 = vpow2.f32 %v719_v46  ;;  %v1008_v32 = vld [vmem:[#allocation5 + $0x18] sm:$0xff] }
 0x469   : > { %v887_v37 = vsel %vm612_vm5, %v882_v35, 0  ;;  %868 = vadd.xlane.f32.xlu0 %v867_v36  ;;  %1435 = vmatmul.mubr.msk.bf16.vlgmr.msra.gmra.mrb[8].mxu1 %vm446_vm2, %v745_v34  ;;  %1597 = vpow2.f32 %v580_v49 }
 0x46a   : > { %1445 = vmatpush3.bf16.msra.mxu1 %v887_v37  ;;  %1446 = vmatprep.mubr.msk.bf16.mxu1 %vm1826_vm0, %v1825_v0 }
 0x46b   : > { %1456 = vmatprep.subr.bf16.mxu1 %v1825_v0 }
 0x46c   : > { %v1017_v39 = vpop.permute.xlu1 %1016 }
 0x46d   : > { %v1022_v43 = vsel %vm612_vm5, %v1017_v39, 0 }
 0x46f   : > { %v1590_v40 = vpop.eup %1589 }
 0x470   : > { %v1002_v42 = vsel %vm446_vm2, %v1590_v40, 0.0  ;;  %v1592_v44 = vpop.eup %1591  ;;  %v1015_v45 = vpack.c.bf16 %v1590_v40, %v1590_v40  ;;  %v1581_v40 = vld [vmem:[#allocation12] sm:$0xff]  }
 0x471   : > { %1003 = vadd.xlane.f32.xlu0 %v1002_v42  ;;  %1447 = vmatmul.mubr.msk.bf16.vlgmr.msra.gmra.mrb[12].mxu1 %vm446_vm2, %v880_v41  ;;  %v1594_v47 = vpop.eup %1593  ;;  %v866_v63 = vmul.f32 %v1592_v44, %v865_v59 }
 0x472   : > { %1457 = vmatpush3.bf16.msra.mxu1 %v1022_v43  ;;  %1458 = vmatprep.mubr.msk.bf16.mxu1 %vm1826_vm0, %v1825_v0  ;;  %v1596_v48 = vpop.eup %1595  ;;  %v1001_v61 = vmul.f32 %v1594_v47, %v1000_v60  ;;  %v1365_v60 = vld [vmem:[%s2317_s5] ss:$0 sm:$0xff] }
 0x473   : > { %v731_v51 = vmul.f32 %v1596_v48, %v730_v50  ;;  %v1598_v52 = vpop.eup %1597  ;;  %1463 = vmatpush3.bf16.msra.mxu0 %v1581_v40 }
 0x474   : > { %v591_v56 = vmul.f32 %v1598_v52, %v590_v54  ;;  %1464 = vmatprep.subr.bf16.mxu0 %v1825_v0 }
 0x476   : > { %876 = vperm.xlu1 %1575, %v1592_v44   ;;  %v1582_v44 = vld [vmem:[#allocation12 + $0x8] sm:$0xff]  }
 0x477   : > { %1465 = vmatpush3.bf16.msra.mxu0 %v1582_v44 }
 0x479   : > { %1459 = vmatmul.mubr.msk.bf16.vlgmr.msra.gmra.mrb[16].mxu1 %vm446_vm2, %v1015_v45 }
 0x47a   : > { %1011 = vperm.xlu1 %1575, %v1594_v47  }
 0x487   : > { %741 = vperm.xlu0 %1574, %v1596_v48   ;;  %v598_v48 = vld [vmem:[#allocation5] sm:$0xff] }
 0x4ee   : > { %v734_v53 = vpop.xlane.xlu1 %733 }
 0x4ef   : > { %v735_v55 = vadd.f32 %v734_v53, %v731_v51 }
 0x4f1   : > { %736 = vst.msk [vmem:[#allocation4 + $0x8] sm:$0xff] %vm437_vm4, %v735_v55 }
 0x4f2   : > { %v594_v57 = vpop.xlane.xlu1 %593 }
 0x4f3   : > { %v595_v62 = vadd.f32 %v594_v57, %v591_v56 }
 0x4f5   : > { %597 = vst.msk [vmem:[#allocation4] sm:$0xff] %vm437_vm4, %v595_v62 }
 0x4f6   : > { %v869_v1 = vpop.xlane.xlu0 %868  ;;  %v877_v25 = vpop.permute.xlu1 %876 }
 0x4f7   : > { %v870_v2 = vadd.f32 %v869_v1, %v866_v63  ;;  %v879_v26 = vmul.f32 %v877_v25, %v873_v24 }
 0x4f8   : > { %v1080_v58 = vld [vmem:[#allocation4 + $0x8] sm:$0xff] }
 0x4f9   : > { %871 = vst.msk [vmem:[#allocation4 + $0x10] sm:$0xff] %vm437_vm4, %v870_v2  ;;  %1599 = vrcp.f32 %v1080_v58 }
 0x4fa   : > { %v1012_v33 = vpop.permute.xlu1 %1011 }
 0x4fb   : > { %v1014_v34 = vmul.f32 %v1012_v33, %v1008_v32 }
 0x4fc   : > { %v1071_v8 = vld [vmem:[#allocation4] sm:$0xff] }
 0x4fe   : > { %v1004_v3 = vpop.xlane.xlu0 %1003 }
 0x4ff   : > { %v1005_v4 = vadd.f32 %v1004_v3, %v1001_v61 }
 0x500   : > { %v1089_v5 = vld [vmem:[#allocation4 + $0x10] sm:$0xff] }
 0x501   : > { %1006 = vst.msk [vmem:[#allocation4 + $0x18] sm:$0xff] %vm437_vm4, %v1005_v4  ;;  %1601 = vrcp.f32 %v1089_v5 }
 0x503   : > { %v1600_v6 = vpop.eup %1599 }
 0x504   : > { %1084 = vperm.xlu0 %1574, %v1600_v6  }
 0x506   : > { %v742_v17 = vpop.permute.xlu0 %741 }
 0x507   : > { %v744_v18 = vmul.f32 %v742_v17, %v738_v16 }
 0x508   : > { %v1098_v7 = vld [vmem:[#allocation4 + $0x18] sm:$0xff] }
 0x509   : > { %1603 = vrcp.f32 %v1098_v7 }
 0x50a   : > { %1605 = vrcp.f32 %v1071_v8 }
 0x50b   : > { %v1602_v9 = vpop.eup %1601 }
 0x50c   : > { %1093 = vperm.xlu1 %1575, %v1602_v9  }
 0x510   : > { %601 = vperm.xlu1 %1575, %v1598_v52  }
 0x513   : > { %v1604_v10 = vpop.eup %1603 }
 0x514   : > { %1102 = vperm.xlu0 %1574, %v1604_v10   ;;  %v1606_v11 = vpop.eup %1605 }
 0x518   : > { %1075 = vperm.xlu0 %1574, %v1606_v11  }
 0x534   : > { %v650_v12 = vpop.f32.mrb[4].mxu1 }
 0x535   : > { %v1424_v13 = vpop.f32.mrb[5].mxu1 }
 0x536   : > { %v653_v14 = vpop.f32.mrb[6].mxu1 }
 0x537   : > { %v1425_v15 = vpop.f32.mrb[7].mxu1 }
 0x53c   : > { %v788_v19 = vpop.f32.mrb[8].mxu1 }
 0x53d   : > { %v794_v20 = vadd.f32 %v788_v19, %v744_v18  ;;  %v1436_v21 = vpop.f32.mrb[9].mxu1 }
 0x53e   : > { %v791_v22 = vpop.f32.mrb[10].mxu1 }
 0x53f   : > { %795 = vst.msk [vmem:[#allocation5 + $0x8] sm:$0xff] %vm446_vm2, %v794_v20  ;;  %v1437_v23 = vpop.f32.mrb[11].mxu1 }
 0x544   : > { %v923_v27 = vpop.f32.mrb[12].mxu1 }
 0x545   : > { %v929_v28 = vadd.f32 %v923_v27, %v879_v26  ;;  %v1448_v29 = vpop.f32.mrb[13].mxu1 }
 0x546   : > { %v926_v30 = vpop.f32.mrb[14].mxu1  ;;  %v1079_v41 = vld [vmem:[#allocation5 + $0x8] sm:$0xff] }
 0x547   : > { %930 = vst.msk [vmem:[#allocation5 + $0x10] sm:$0xff] %vm446_vm2, %v929_v28  ;;  %v1449_v31 = vpop.f32.mrb[15].mxu1 }
 0x54c   : > { %v1058_v35 = vpop.f32.mrb[16].mxu1 }
 0x54d   : > { %v1064_v36 = vadd.f32 %v1058_v35, %v1014_v34  ;;  %v1460_v37 = vpop.f32.mrb[17].mxu1 }
 0x54e   : > { %v1061_v38 = vpop.f32.mrb[18].mxu1  ;;  %v1088_v45 = vld [vmem:[#allocation5 + $0x10] sm:$0xff] }
 0x54f   : > { %1065 = vst.msk [vmem:[#allocation5 + $0x18] sm:$0xff] %vm446_vm2, %v1064_v36  ;;  %v1461_v39 = vpop.f32.mrb[19].mxu1 }
 0x556   : > { %v1097_v53 = vld [vmem:[#allocation5 + $0x18] sm:$0xff] }
 0x583   : > { %v1085_v42 = vpop.permute.xlu0 %1084 }
 0x584   : > { %v1087_v43 = vmul.f32 %v1085_v42, %v1079_v41 }
 0x586   : > { %1107 = vrot.lane.b32.xlu1 %v1087_v43, %s1836_s20 }
 0x58b   : > { %v1094_v46 = vpop.permute.xlu1 %1093 }
 0x58c   : > { %v1096_v47 = vmul.f32 %v1094_v46, %v1088_v45 }
 0x58e   : > { %1111 = vrot.lane.b32.xlu0 %v1096_v47, %s1837_s11 }
 0x58f   : > { %v602_v49 = vpop.permute.xlu1 %601 }
 0x590   : > { %v604_v50 = vmul.f32 %v602_v49, %v598_v48 }
 0x592   : > { %v656_v51 = vadd.f32 %v650_v12, %v604_v50 }
 0x593   : > { %v1103_v52 = vpop.permute.xlu0 %1102 }
 0x594   : > { %657 = vst.msk [vmem:[#allocation5] sm:$0xff] %vm446_vm2, %v656_v51  ;;  %v1105_v54 = vmul.f32 %v1103_v52, %v1097_v53 }
 0x596   : > { %1115 = vrot.lane.b32.xlu1 %v1105_v54, %s1838_s19 }
 0x597   : > { %v1076_v0 = vpop.permute.xlu0 %1075 }
 0x59b   : > { %v1070_v55 = vld [vmem:[#allocation5] sm:$0xff] }
 0x59c   : > { %v1078_v57 = vmul.f32 %v1076_v0, %v1070_v55 }
 0x5f8   : > { %v1108_v56 = vpop.permute.xlu1 %1107 }
 0x5f9   : > { %v1118_v62 = vsel %vm446_vm2, %v1078_v57, %v1108_v56 }
 0x600   : > { %v1112_v59 = vpop.permute.xlu0 %1111 }
 0x601   : > { %v1120_v63 = vsel %vm1119_vm6, %v1118_v62, %v1112_v59 }
 0x608   : > { %v1116_v1 = vpop.permute.xlu1 %1115 }
 0x609   : > { %v1122_v2 = vsel %vm1121_vm7, %v1120_v63, %v1116_v1 }
 0x60a   : > { %v1123_v58 = vpack.c.bf16 %v1122_v2, %v1122_v2 }
 0x60c   : > { %1467 = vmatmul.mubr.msk.bf16.vlgmr.msra.gmra.mrb[20].mxu0 %vm389_vm1, %v1123_v58 }
 0x6df   : > { %v1184_v61 = vpop.f32.mrb[20].mxu0 }
 0x6e0   : > { %v1185_v3 = vadd.f32 %v1365_v60, %v1184_v61  ;;  %v1468_v4 = vpop.f32.mrb[21].mxu0 }
 0x6e1   : > { %v1187_v5 = vpop.f32.mrb[22].mxu0 }
 0x6e2   : > { %v1469_v6 = vpop.f32.mrb[23].mxu0  ;;  %1190 = vst.msk [vmem:[%s359_s18] sm:$0xff] %vm389_vm1, %v1185_v3 }
 0x6e3   : > { %1736 = shalt.err (!%p1733_p7)
}
 0x6e4   : > { %s1737_s2 = scalar_lea.hbm %s2262_s8, 128  ;;  %s1741_s20 = scalar_lea.hbm %s2318_s6, 256 }
 0x6e5   : > { %p1738_p13 = scmp.ne.s32.totalorder %s2262_s8, %s1737_s2  ;;  %p1742_p11 = scmp.lt.u32.totalorder %s2262_s8, %s2318_s6 }
 0x6e6   : > { %p1743_p12 = scmp.lt.u32.totalorder %s1741_s20, %s1737_s2  ;;  %p1745_p1 = scmp.lt.u32.totalorder %s1737_s2, %s2262_s8 }
 0x6e7   : > { %p1739_p2 = pnand %p1738_p13, %p2345_p6 }
 0x6e8   : > { %p1744_p0 = por %p1743_p12, %p1742_p11 }
 0x6e9   : > { %p1740_p8 = pneg %p1739_p2 }
 0x6ea   : > { %p1746_p10 = por %p1745_p1, %p1744_p0 }
 0x6ec   : > { %p1747_p3 = pnand %p1746_p10, %p1740_p8 }
 0x6ee   : > { %1750 = shalt.err (!%p1747_p3)
}
 0x6ef   : > { %1482 = dma.vmem_to_hbm [thread:$0]  (%p2345_p6), %s2264_s7, 128, %s2262_s8, %s1192_s24  }
 0x6f0 PF: > { %s1218_s14 = sand.u32 1, %s1797_s21   ;;  %p2346_p4 = scmp.ne.s32.totalorder %s2329_s30, 0 }
 0x6f1   : > { %p2347_p9 = scmp.ge.s32.totalorder %s1817_s26, 2  ;;  %s1219_s16 = scalar_lea.sflag [#allocation8], %s1218_s14 }
 0x6f3   : > { %p1499_p5 = pnand %p2347_p9, %p2346_p4 }
 0x6f5   : > { %1792 = dma.done.wait (!%p1499_p5), %s1219_s16, 128  }
 0x6f6   : > { %1794 = vsyncadd (!%p1499_p5), %s1219_s16, 4294967168  ;;  %s26_s26 = sadd.s32 1, %s1817_s26   ;;  %s2348_s10 = sld [smem:[#allocation22_spill]] }
 0x6f7   : > { %p23_p7 = scmp.ge.s32.totalorder %s26_s26, 4   ;;  %s2349_s24 = sld [smem:[#allocation20_spill]] }
 0x6f8   : > { %s2350_s25 = sld [smem:[#allocation21_spill]]  ;;  %s2351_s21 = smov %s1801_s22 }
 0x6f9   : > { %s2352_s22 = smov %s1805_s23  ;;  %25 = sbr.rel (!%p23_p7) target bundleno = 12 (0xc), region = 127 }
 0x6fc   : > { %s2353_s23 = smov %s2348_s10 }
 0x700   :  { %1224 = vsyncpa [#allocation7], 1 }
 0x701   :  { %1226 = vsyncpa [#allocation7 + $0x1], 1 }
 0x702   :  { %1227 = vsyncpa [#allocation10], 1 }
 0x703   :  { %1229 = vsyncpa [#allocation10 + $0x1], 1 }
 0x704   :  { %1230 = vsyncpa [#allocation13], 1 }
 0x705   :  { %1231 = vsyncpa [#allocation8], 1 }
 0x706   :  { %1233 = vsyncpa [#allocation8 + $0x1], 1 }

</bundles_post_ra>
